<compile_context>
chip_gen: v7x
topology: tpu7x:2x2x1
jax: 0.10.0
libtpu: 0.0.40
codegen_flags: <defaults>
</compile_context>

<pallas_src>
import functools

import jax
import jax.numpy as jnp
from jax.experimental import pallas as pl
from jax.experimental.pallas import tpu as pltpu

fc_configs = {
    '4-layer': [512, 256, 128, 64],
    '5-layer': [1024, 512, 256, 128, 64],
    '6-layer': [1024, 512, 256, 256, 128, 64],
    '7-layer': [1024, 512, 512, 256, 256, 128, 64],
    '8-layer': [1024, 512, 512, 256, 256, 128, 128, 64],
}

_LANE = 128          # vreg lane width
_SUBLANE_BF16 = 16   # bf16 sublane packing (also a multiple of the f32 pack of 8)
_TILE_N = 256        # batch tile when gridding over large batches


def _round_up(x: int, m: int) -> int:
    return (x + m - 1) // m * m


def _fused_mlp_kernel(num_layers, *refs):
    """refs = (x, w0, b0, w1, b1, ..., w{L-1}, b{L-1}, out).

    Chains dot -> +bias -> ReLU entirely in VMEM/vregs; only the final logits
    are written back to HBM.
    """
    x_ref = refs[0]
    o_ref = refs[-1]
    h = x_ref[...]                                        # bf16 [tile_n, d_pad]
    for i in range(num_layers):
        w = refs[1 + 2 * i][...]                          # bf16 [d_in_pad, d_out_pad]
        b = refs[2 + 2 * i][...]                          # f32  [1, d_out_pad]
        y = jnp.dot(h, w, preferred_element_type=jnp.float32) + b
        if i < num_layers - 1:
            h = jnp.maximum(y, 0.0).astype(jnp.bfloat16)  # ReLU, back to bf16 for MXU
        else:
            o_ref[...] = y.astype(o_ref.dtype)            # classifier: no activation


def init_fcnet_params(key, config: str, input_dim_tuple, classes: int):
    """PyTorch-Linear-like init (uniform +-1/sqrt(fan_in)), f32 master weights."""
    hidden = fc_configs[config]
    # The PyTorch module hardcodes self.out = nn.Linear(64, classes); make that
    # assumption explicit instead of silently mismatching a future config.
    assert hidden[-1] == 64, "FcNet.out is Linear(64, classes); last hidden must be 64"

    d = 1
    for s in input_dim_tuple:
        d *= s
    dims = []
    for h in hidden:
        dims.append((d, h))
        d = h
    dims.append((64, classes))  # self.out

    params = []
    for fan_in, fan_out in dims:
        key, kw, kb = jax.random.split(key, 3)
        bound = 1.0 / (fan_in ** 0.5)
        w = jax.random.uniform(kw, (fan_in, fan_out), jnp.float32, -bound, bound)
        b = jax.random.uniform(kb, (fan_out,), jnp.float32, -bound, bound)
        params.append((w, b))
    return params


def fcnet_forward(x, params, classes: int):
    """FcNet forward (inference mode). x: [N, C, H, W] (any trailing shape)."""
    # TODO(synk): training-mode dropout (random mask + 1/(1-p) scaling) not
    # implemented; eval-mode Dropout(p=0.5) is the identity.
    n = x.shape[0]
    flat = x.reshape(n, -1).astype(jnp.float32)        # torch.flatten(x, 1)
    d_in = flat.shape[1]

    use_grid = n > _TILE_N
    n_pad = _round_up(n, _TILE_N) if use_grid else _round_up(n, _SUBLANE_BF16)
    d_in_pad = _round_up(d_in, _LANE)

    # Zero-pad + cast activations/weights to bf16 (f32 accumulation in-kernel).
    x_p = jnp.zeros((n_pad, d_in_pad), jnp.bfloat16)
    x_p = x_p.at[:n, :d_in].set(flat.astype(jnp.bfloat16))

    padded = []
    prev_pad = d_in_pad
    for (w, b) in params:
        fi, fo = w.shape
        fo_pad = _round_up(fo, _LANE)
        w_p = jnp.zeros((prev_pad, fo_pad), jnp.bfloat16).at[:fi, :fo].set(
            w.astype(jnp.bfloat16))
        b_p = jnp.zeros((1, fo_pad), jnp.float32).at[0, :fo].set(
            b.astype(jnp.float32))
        padded.append((w_p, b_p))
        prev_pad = fo_pad

    num_layers = len(params)
    d_out_pad = padded[-1][0].shape[1]
    kernel = functools.partial(_fused_mlp_kernel, num_layers)

    flat_args = [x_p]
    for w_p, b_p in padded:
        flat_args.extend((w_p, b_p))

    out_shape = jax.ShapeDtypeStruct((n_pad, d_out_pad), jnp.float32)

    if not use_grid:
        # Small batch: single invocation, whole arrays resident in VMEM,
        # no degenerate grid / pipeline machinery.
        out = pl.pallas_call(kernel, out_shape=out_shape)(*flat_args)
    else:
        # Large batch: tile the batch axis and mark it parallel so both v7x
        # TensorCores get work (no effect on v5e/v6e, which have one TC).
        # Weight/bias BlockSpecs return a constant block index -> the pipeline
        # keeps them resident instead of re-fetching per tile.
        in_specs = [pl.BlockSpec((_TILE_N, d_in_pad), lambda i: (i, 0))]
        for w_p, b_p in padded:
            in_specs.append(pl.BlockSpec(w_p.shape, lambda i: (0, 0)))
            in_specs.append(pl.BlockSpec(b_p.shape, lambda i: (0, 0)))
        out = pl.pallas_call(
            kernel,
            out_shape=out_shape,
            grid=(n_pad // _TILE_N,),
            in_specs=in_specs,
            out_specs=pl.BlockSpec((_TILE_N, d_out_pad), lambda i: (i, 0)),
            compiler_params=pltpu.CompilerParams(
                dimension_semantics=("parallel",)),
        )(*flat_args)

    return out[:n, :classes]


def fcnet_reference(x, params):
    """Pure-JAX f32 reference (eval-mode dropout = identity)."""
    n = x.shape[0]
    h = x.reshape(n, -1).astype(jnp.float32)
    for (w, b) in params[:-1]:
        h = jnp.maximum(h @ w + b, 0.0)
    w, b = params[-1]
    return h @ w + b


if __name__ == "__main__":
    key = jax.random.PRNGKey(0)
    k_x, k_p, k_big = jax.random.split(key, 3)

    batch, c, hgt, wid = 2, 4, 16, 16
    classes = 10
    config = '4-layer'

    params = init_fcnet_params(k_p, config, (c, hgt, wid), classes)

    # Jit the whole wrapper so the pad/cast/slice plumbing fuses into one
    # XLA program around the single fused Pallas kernel.
    fwd = jax.jit(fcnet_forward, static_argnames=("classes",))

    # Small batch: exercises the fused, no-grid path.
    x = jax.random.normal(k_x, (batch, c, hgt, wid), jnp.float32)
    out = jax.block_until_ready(fwd(x, params, classes=classes))
    assert out.shape == (batch, classes), out.shape
    ref = fcnet_reference(x, params)
    assert jnp.allclose(out, ref, rtol=0.1, atol=0.05), (
        "max abs diff (small batch): %f" % float(jnp.max(jnp.abs(out - ref))))

    # Larger batch: exercises the batch-tiled, "parallel" grid path.
    xb = jax.random.normal(k_big, (512, c, hgt, wid), jnp.float32)
    outb = jax.block_until_ready(fwd(xb, params, classes=classes))
    assert outb.shape == (512, classes), outb.shape
    refb = fcnet_reference(xb, params)
    assert jnp.allclose(outb, refb, rtol=0.1, atol=0.05), (
        "max abs diff (large batch): %f" % float(jnp.max(jnp.abs(outb - refb))))

    print("KERNEL_OK")
</pallas_src>

<mosaic_0001>
module attributes {stable_mosaic.version = 11 : i64} {
  func.func @_fused_mlp_kernel(%arg0: memref<16x1024xbf16, #tpu.memory_space<vmem>>, %arg1: memref<1024x512xbf16, #tpu.memory_space<vmem>>, %arg2: memref<1x512xf32, #tpu.memory_space<vmem>>, %arg3: memref<512x256xbf16, #tpu.memory_space<vmem>>, %arg4: memref<1x256xf32, #tpu.memory_space<vmem>>, %arg5: memref<256x128xbf16, #tpu.memory_space<vmem>>, %arg6: memref<1x128xf32, #tpu.memory_space<vmem>>, %arg7: memref<128x128xbf16, #tpu.memory_space<vmem>>, %arg8: memref<1x128xf32, #tpu.memory_space<vmem>>, %arg9: memref<128x128xbf16, #tpu.memory_space<vmem>>, %arg10: memref<1x128xf32, #tpu.memory_space<vmem>>, %arg11: memref<16x128xf32, #tpu.memory_space<vmem>>) attributes {dimension_semantics = [], scalar_prefetch = 0 : i64, scratch_operands = 0 : i64, tpu.core_type = #tpu.core_type<tc>} {
    %c0 = arith.constant 0 : index
    %c0_0 = arith.constant 0 : index
    %0 = vector.load %arg0[%c0, %c0_0] : memref<16x1024xbf16, #tpu.memory_space<vmem>>, vector<16x1024xbf16>
    %c0_1 = arith.constant 0 : index
    %c0_2 = arith.constant 0 : index
    %1 = vector.load %arg1[%c0_1, %c0_2] : memref<1024x512xbf16, #tpu.memory_space<vmem>>, vector<1024x512xbf16>
    %c0_3 = arith.constant 0 : index
    %c0_4 = arith.constant 0 : index
    %2 = vector.load %arg2[%c0_3, %c0_4] : memref<1x512xf32, #tpu.memory_space<vmem>>, vector<1x512xf32>
    %cst = arith.constant dense<0.000000e+00> : vector<16x512xf32>
    %3 = tpu.matmul %0, %1, %cst {dimension_numbers = #tpu.dot_dimension_numbers<[1], [0], [0], [1], [0, 0, 1, 1], [], []>} : vector<16x1024xbf16>, vector<1024x512xbf16>, vector<16x512xf32> -> vector<16x512xf32>
    %4 = vector.broadcast %2 : vector<1x512xf32> to vector<16x512xf32>
    %5 = arith.addf %3, %4 : vector<16x512xf32>
    %cst_5 = arith.constant 0.000000e+00 : f32
    %6 = vector.broadcast %cst_5 : f32 to vector<16x512xf32>
    %7 = arith.maximumf %5, %6 : vector<16x512xf32>
    %8 = arith.truncf %7 : vector<16x512xf32> to vector<16x512xbf16>
    %c0_6 = arith.constant 0 : index
    %c0_7 = arith.constant 0 : index
    %9 = vector.load %arg3[%c0_6, %c0_7] : memref<512x256xbf16, #tpu.memory_space<vmem>>, vector<512x256xbf16>
    %c0_8 = arith.constant 0 : index
    %c0_9 = arith.constant 0 : index
    %10 = vector.load %arg4[%c0_8, %c0_9] : memref<1x256xf32, #tpu.memory_space<vmem>>, vector<1x256xf32>
    %cst_10 = arith.constant dense<0.000000e+00> : vector<16x256xf32>
    %11 = tpu.matmul %8, %9, %cst_10 {dimension_numbers = #tpu.dot_dimension_numbers<[1], [0], [0], [1], [0, 0, 1, 1], [], []>} : vector<16x512xbf16>, vector<512x256xbf16>, vector<16x256xf32> -> vector<16x256xf32>
    %12 = vector.broadcast %10 : vector<1x256xf32> to vector<16x256xf32>
    %13 = arith.addf %11, %12 : vector<16x256xf32>
    %cst_11 = arith.constant 0.000000e+00 : f32
    %14 = vector.broadcast %cst_11 : f32 to vector<16x256xf32>
    %15 = arith.maximumf %13, %14 : vector<16x256xf32>
    %16 = arith.truncf %15 : vector<16x256xf32> to vector<16x256xbf16>
    %c0_12 = arith.constant 0 : index
    %c0_13 = arith.constant 0 : index
    %17 = vector.load %arg5[%c0_12, %c0_13] : memref<256x128xbf16, #tpu.memory_space<vmem>>, vector<256x128xbf16>
    %c0_14 = arith.constant 0 : index
    %c0_15 = arith.constant 0 : index
    %18 = vector.load %arg6[%c0_14, %c0_15] : memref<1x128xf32, #tpu.memory_space<vmem>>, vector<1x128xf32>
    %cst_16 = arith.constant dense<0.000000e+00> : vector<16x128xf32>
    %19 = tpu.matmul %16, %17, %cst_16 {dimension_numbers = #tpu.dot_dimension_numbers<[1], [0], [0], [1], [0, 0, 1, 1], [], []>} : vector<16x256xbf16>, vector<256x128xbf16>, vector<16x128xf32> -> vector<16x128xf32>
    %20 = vector.broadcast %18 : vector<1x128xf32> to vector<16x128xf32>
    %21 = arith.addf %19, %20 : vector<16x128xf32>
    %cst_17 = arith.constant 0.000000e+00 : f32
    %22 = vector.broadcast %cst_17 : f32 to vector<16x128xf32>
    %23 = arith.maximumf %21, %22 : vector<16x128xf32>
    %24 = arith.truncf %23 : vector<16x128xf32> to vector<16x128xbf16>
    %c0_18 = arith.constant 0 : index
    %c0_19 = arith.constant 0 : index
    %25 = vector.load %arg7[%c0_18, %c0_19] : memref<128x128xbf16, #tpu.memory_space<vmem>>, vector<128x128xbf16>
    %c0_20 = arith.constant 0 : index
    %c0_21 = arith.constant 0 : index
    %26 = vector.load %arg8[%c0_20, %c0_21] : memref<1x128xf32, #tpu.memory_space<vmem>>, vector<1x128xf32>
    %cst_22 = arith.constant dense<0.000000e+00> : vector<16x128xf32>
    %27 = tpu.matmul %24, %25, %cst_22 {dimension_numbers = #tpu.dot_dimension_numbers<[1], [0], [0], [1], [0, 0, 1, 1], [], []>} : vector<16x128xbf16>, vector<128x128xbf16>, vector<16x128xf32> -> vector<16x128xf32>
    %28 = vector.broadcast %26 : vector<1x128xf32> to vector<16x128xf32>
    %29 = arith.addf %27, %28 : vector<16x128xf32>
    %cst_23 = arith.constant 0.000000e+00 : f32
    %30 = vector.broadcast %cst_23 : f32 to vector<16x128xf32>
    %31 = arith.maximumf %29, %30 : vector<16x128xf32>
    %32 = arith.truncf %31 : vector<16x128xf32> to vector<16x128xbf16>
    %c0_24 = arith.constant 0 : index
    %c0_25 = arith.constant 0 : index
    %33 = vector.load %arg9[%c0_24, %c0_25] : memref<128x128xbf16, #tpu.memory_space<vmem>>, vector<128x128xbf16>
    %c0_26 = arith.constant 0 : index
    %c0_27 = arith.constant 0 : index
    %34 = vector.load %arg10[%c0_26, %c0_27] : memref<1x128xf32, #tpu.memory_space<vmem>>, vector<1x128xf32>
    %cst_28 = arith.constant dense<0.000000e+00> : vector<16x128xf32>
    %35 = tpu.matmul %32, %33, %cst_28 {dimension_numbers = #tpu.dot_dimension_numbers<[1], [0], [0], [1], [0, 0, 1, 1], [], []>} : vector<16x128xbf16>, vector<128x128xbf16>, vector<16x128xf32> -> vector<16x128xf32>
    %36 = vector.broadcast %34 : vector<1x128xf32> to vector<16x128xf32>
    %37 = arith.addf %35, %36 : vector<16x128xf32>
    %c0_29 = arith.constant 0 : index
    %c0_30 = arith.constant 0 : index
    %38 = vector.load %arg11[%c0_29, %c0_30] : memref<16x128xf32, #tpu.memory_space<vmem>>, vector<16x128xf32>
    tpu.vector_store %arg11[%c0_29, %c0_30], %37 {strides = array<i32>} : memref<16x128xf32, #tpu.memory_space<vmem>>, vector<16x128xf32>,
    return
  }
}

</mosaic_0001>

<bundles_post_ra>
// kernel: fcnet_forward.1
= control target key start
LH: loop header
LB: loop body
LE: loop exit
PB: predicated region body
PF: predicated region fallthrough
CT: control target
= control target key end

     0   :  { %vm3899_vm0 = vmmov 0   ;;  %s5122_s1 = inlined_call_operand.vmem [shape: bf16[1024,512], index: 1, kind: input, shape index: {}]   ;;  %s5123_s0 = inlined_call_operand.vmem [shape: bf16[16,1024], index: 0, kind: input, shape index: {}]   ;;  %s5124_s3 = inlined_call_operand.vmem [shape: bf16[512,256], index: 3, kind: input, shape index: {}]   ;;  %s5125_s5 = inlined_call_operand.vmem [shape: bf16[256,128], index: 5, kind: input, shape index: {}]   ;;  %s5126_s2 = inlined_call_operand.vmem [shape: f32[1,512], index: 2, kind: input, shape index: {}]   ;;  %s5127_s7 = inlined_call_operand.vmem [shape: bf16[128,128], index: 7, kind: input, shape index: {}]   ;;  %s5128_s4 = inlined_call_operand.vmem [shape: f32[1,256], index: 4, kind: input, shape index: {}]   ;;  %s5129_s9 = inlined_call_operand.vmem [shape: bf16[128,128], index: 9, kind: input, shape index: {}]   ;;  %s5130_s6 = inlined_call_operand.vmem [shape: f32[1,128], index: 6, kind: input, shape index: {}]   ;;  %s5131_s8 = inlined_call_operand.vmem [shape: f32[1,128], index: 8, kind: input, shape index: {}]   ;;  %s5132_s10 = inlined_call_operand.vmem [shape: f32[1,128], index: 10, kind: input, shape index: {}]   ;;  %s5133_s11 = inlined_call_operand.vmem [shape: f32[16,128], index: 11, kind: output, shape index: {}]  }
   0x1   :  { %v3386_v0 = vld [vmem:[%s5122_s1 + $0x4] ss:$16 sps:$4 sm:$0xff]   ;;  %v3388_v1 = vld [vmem:[%s5122_s1 + $0xc] ss:$16 sps:$4 sm:$0xff]   ;;  %v3390_v2 = vld [vmem:[%s5122_s1] ss:$16 sps:$4 sm:$0xff]  }
   0x2   :  { %1645 = vmatprep.subr.bf16.mxu0 %v3386_v0  ;;  %v3391_v3 = vld [vmem:[%s5122_s1 + $0x8] ss:$16 sps:$4 sm:$0xff]   ;;  %1817 = vmatprep.subr.bf16.mxu1 %v3388_v1  ;;  %v3392_v4 = vld [vmem:[%s5122_s1 + $0x24] ss:$16 sps:$4 sm:$0xff]   ;;  %v3394_v5 = vld [vmem:[%s5122_s1 + $0x2c] ss:$16 sps:$4 sm:$0xff]  }
   0x3   :  { %1646 = vmatpush1.bf16.msra.mxu0 %v3390_v2  ;;  %1818 = vmatpush1.bf16.msra.mxu1 %v3391_v3  ;;  %v3396_v6 = vld [vmem:[%s5122_s1 + $0x20] ss:$16 sps:$4 sm:$0xff]   ;;  %v3397_v7 = vld [vmem:[%s5122_s1 + $0x28] ss:$16 sps:$4 sm:$0xff]   ;;  %v3398_v8 = vld [vmem:[%s5122_s1 + $0x44] ss:$16 sps:$4 sm:$0xff]  }
   0x4   :  { %1647 = vmatprep.subr.bf16.mxu0 %v3392_v4  ;;  %1819 = vmatprep.subr.bf16.mxu1 %v3394_v5  ;;  %v3400_v9 = vld [vmem:[%s5122_s1 + $0x4c] ss:$16 sps:$4 sm:$0xff]   ;;  %v3402_v10 = vld [vmem:[%s5122_s1 + $0x40] ss:$16 sps:$4 sm:$0xff]   ;;  %v3403_v11 = vld [vmem:[%s5122_s1 + $0x48] ss:$16 sps:$4 sm:$0xff]  }
   0x5   :  { %v3404_v12 = vld [vmem:[%s5122_s1 + $0x64] ss:$16 sps:$4 sm:$0xff]   ;;  %v3406_v13 = vld [vmem:[%s5122_s1 + $0x6c] ss:$16 sps:$4 sm:$0xff]   ;;  %v3408_v14 = vld [vmem:[%s5122_s1 + $0x60] ss:$16 sps:$4 sm:$0xff]  }
   0x6   :  { %v3409_v15 = vld [vmem:[%s5122_s1 + $0x68] ss:$16 sps:$4 sm:$0xff]   ;;  %v3410_v16 = vld [vmem:[%s5122_s1 + $0x84] ss:$16 sps:$4 sm:$0xff]   ;;  %v3412_v17 = vld [vmem:[%s5122_s1 + $0x8c] ss:$16 sps:$4 sm:$0xff]  }
   0x7   :  { %1648 = vmatpush1.bf16.msra.mxu0 %v3396_v6  ;;  %1820 = vmatpush1.bf16.msra.mxu1 %v3397_v7  ;;  %v3414_v18 = vld [vmem:[%s5122_s1 + $0x80] ss:$16 sps:$4 sm:$0xff]   ;;  %v3415_v19 = vld [vmem:[%s5122_s1 + $0x88] ss:$16 sps:$4 sm:$0xff]   ;;  %v3416_v20 = vld [vmem:[%s5122_s1 + $0xa4] ss:$16 sps:$4 sm:$0xff]  }
   0x8   :  { %1649 = vmatprep.subr.bf16.mxu0 %v3398_v8  ;;  %1821 = vmatprep.subr.bf16.mxu1 %v3400_v9  ;;  %v3418_v21 = vld [vmem:[%s5122_s1 + $0xac] ss:$16 sps:$4 sm:$0xff]   ;;  %v3420_v22 = vld [vmem:[%s5122_s1 + $0xa0] ss:$16 sps:$4 sm:$0xff]   ;;  %v3421_v23 = vld [vmem:[%s5122_s1 + $0xa8] ss:$16 sps:$4 sm:$0xff]  }
   0x9   :  { %v3422_v24 = vld [vmem:[%s5122_s1 + $0xc4] ss:$16 sps:$4 sm:$0xff]   ;;  %v3424_v25 = vld [vmem:[%s5122_s1 + $0xcc] ss:$16 sps:$4 sm:$0xff]   ;;  %v3426_v26 = vld [vmem:[%s5122_s1 + $0xc0] ss:$16 sps:$4 sm:$0xff]  }
   0xa   :  { %v3427_v27 = vld [vmem:[%s5122_s1 + $0xc8] ss:$16 sps:$4 sm:$0xff]   ;;  %v3428_v28 = vld [vmem:[%s5122_s1 + $0xe4] ss:$16 sps:$4 sm:$0xff]   ;;  %v3430_v29 = vld [vmem:[%s5122_s1 + $0xec] ss:$16 sps:$4 sm:$0xff]  }
   0xb   :  { %1650 = vmatpush1.bf16.msra.mxu0 %v3402_v10  ;;  %1822 = vmatpush1.bf16.msra.mxu1 %v3403_v11  ;;  %v3432_v30 = vld [vmem:[%s5122_s1 + $0xe0] ss:$16 sps:$4 sm:$0xff]   ;;  %v3433_v31 = vld [vmem:[%s5122_s1 + $0xe8] ss:$16 sps:$4 sm:$0xff]   ;;  %v3434_v32 = vld [vmem:[%s5122_s1 + $0x104] ss:$16 sps:$4 sm:$0xff]  }
   0xc   :  { %1651 = vmatprep.subr.bf16.mxu0 %v3404_v12  ;;  %1823 = vmatprep.subr.bf16.mxu1 %v3406_v13  ;;  %v3436_v33 = vld [vmem:[%s5122_s1 + $0x10c] ss:$16 sps:$4 sm:$0xff]   ;;  %v3438_v34 = vld [vmem:[%s5122_s1 + $0x100] ss:$16 sps:$4 sm:$0xff]   ;;  %v3439_v35 = vld [vmem:[%s5122_s1 + $0x108] ss:$16 sps:$4 sm:$0xff]  }
   0xd   :  { %v3440_v36 = vld [vmem:[%s5122_s1 + $0x124] ss:$16 sps:$4 sm:$0xff]   ;;  %v3442_v37 = vld [vmem:[%s5122_s1 + $0x12c] ss:$16 sps:$4 sm:$0xff]   ;;  %v3444_v38 = vld [vmem:[%s5122_s1 + $0x120] ss:$16 sps:$4 sm:$0xff]  }
   0xe   :  { %v3445_v39 = vld [vmem:[%s5122_s1 + $0x128] ss:$16 sps:$4 sm:$0xff]   ;;  %v3446_v40 = vld [vmem:[%s5122_s1 + $0x144] ss:$16 sps:$4 sm:$0xff]   ;;  %v3448_v41 = vld [vmem:[%s5122_s1 + $0x14c] ss:$16 sps:$4 sm:$0xff]  }
   0xf   :  { %1652 = vmatpush1.bf16.msra.mxu0 %v3408_v14  ;;  %1824 = vmatpush1.bf16.msra.mxu1 %v3409_v15  ;;  %v3450_v42 = vld [vmem:[%s5122_s1 + $0x140] ss:$16 sps:$4 sm:$0xff]   ;;  %v3451_v43 = vld [vmem:[%s5122_s1 + $0x148] ss:$16 sps:$4 sm:$0xff]   ;;  %v3452_v44 = vld [vmem:[%s5122_s1 + $0x164] ss:$16 sps:$4 sm:$0xff]  }
  0x10   :  { %1653 = vmatprep.subr.bf16.mxu0 %v3410_v16  ;;  %1825 = vmatprep.subr.bf16.mxu1 %v3412_v17  ;;  %v3454_v45 = vld [vmem:[%s5122_s1 + $0x16c] ss:$16 sps:$4 sm:$0xff]   ;;  %v39_v46 = vld [vmem:[%s5123_s0] sm:$0xff]  ;;  %v3457_v49 = vld [vmem:[%s5122_s1 + $0x168] ss:$16 sps:$4 sm:$0xff]  }
  0x11   :  { %v43_v47 = vld [vmem:[%s5123_s0 + $0x20] sm:$0xff]  ;;  %v3460_v52 = vld [vmem:[%s5122_s1 + $0x18c] ss:$16 sps:$4 sm:$0xff]   ;;  %v3463_v54 = vld [vmem:[%s5122_s1 + $0x188] ss:$16 sps:$4 sm:$0xff]  }
  0x12   :  { %v3456_v48 = vld [vmem:[%s5122_s1 + $0x160] ss:$16 sps:$4 sm:$0xff]   ;;  %v2902_v50 = vcombine.high %v39_v46, %v43_v47  ;;  %v3458_v51 = vld [vmem:[%s5122_s1 + $0x184] ss:$16 sps:$4 sm:$0xff]   ;;  %v3466_v56 = vld [vmem:[%s5122_s1 + $0x1ac] ss:$16 sps:$4 sm:$0xff]   ;;  %v2901_v5 = vcombine.low %v39_v46, %v43_v47 }
  0x13   :  { %1654 = vmatpush1.bf16.msra.mxu0 %v3414_v18  ;;  %1826 = vmatpush1.bf16.msra.mxu1 %v3415_v19  ;;  %v3462_v53 = vld [vmem:[%s5122_s1 + $0x180] ss:$16 sps:$4 sm:$0xff]   ;;  %v3464_v55 = vld [vmem:[%s5122_s1 + $0x1a4] ss:$16 sps:$4 sm:$0xff]   ;;  %v3469_v58 = vld [vmem:[%s5122_s1 + $0x1a8] ss:$16 sps:$4 sm:$0xff]  }
  0x14   :  { %1655 = vmatprep.subr.bf16.mxu0 %v3416_v20  ;;  %1827 = vmatprep.subr.bf16.mxu1 %v3418_v21  ;;  %v3468_v57 = vld [vmem:[%s5122_s1 + $0x1a0] ss:$16 sps:$4 sm:$0xff]   ;;  %v3470_v59 = vld [vmem:[%s5122_s1 + $0x1c4] ss:$16 sps:$4 sm:$0xff]   ;;  %v3472_v60 = vld [vmem:[%s5122_s1 + $0x1cc] ss:$16 sps:$4 sm:$0xff]  }
  0x15   :  { %1677 = vmatprep.mubr.bf16.mxu0 %v2902_v50  ;;  %1849 = vmatprep.mubr.bf16.mxu1 %v2902_v50  ;;  %v3474_v61 = vld [vmem:[%s5122_s1 + $0x1c0] ss:$16 sps:$4 sm:$0xff]   ;;  %v3475_v62 = vld [vmem:[%s5122_s1 + $0x1c8] ss:$16 sps:$4 sm:$0xff]   ;;  %v3476_v63 = vld [vmem:[%s5122_s1 + $0x1e4] ss:$16 sps:$4 sm:$0xff]  }
  0x16   :  { %v3478_v0 = vld [vmem:[%s5122_s1 + $0x1ec] ss:$16 sps:$4 sm:$0xff]   ;;  %v3480_v1 = vld [vmem:[%s5122_s1 + $0x1e0] ss:$16 sps:$4 sm:$0xff]   ;;  %v3481_v2 = vld [vmem:[%s5122_s1 + $0x1e8] ss:$16 sps:$4 sm:$0xff]  }
  0x17   :  { %1656 = vmatpush1.bf16.msra.mxu0 %v3420_v22  ;;  %1828 = vmatpush1.bf16.msra.mxu1 %v3421_v23  ;;  %v3484_v3 = vld [vmem:[%s5122_s1 + $0x204] ss:$16 sps:$4 sm:$0xff]   ;;  %v3487_v4 = vld [vmem:[%s5122_s1 + $0x20c] ss:$16 sps:$4 sm:$0xff]   ;;  %v3482_v6 = vld [vmem:[%s5122_s1 + $0x200] ss:$16 sps:$4 sm:$0xff]  }
  0x18   :  { %1657 = vmatprep.subr.bf16.mxu0 %v3422_v24  ;;  %1829 = vmatprep.subr.bf16.mxu1 %v3424_v25  ;;  %v3485_v7 = vld [vmem:[%s5122_s1 + $0x208] ss:$16 sps:$4 sm:$0xff]   ;;  %v3490_v8 = vld [vmem:[%s5122_s1 + $0x224] ss:$16 sps:$4 sm:$0xff]   ;;  %v3493_v9 = vld [vmem:[%s5122_s1 + $0x22c] ss:$16 sps:$4 sm:$0xff]  }
  0x19   :  { %v3488_v10 = vld [vmem:[%s5122_s1 + $0x220] ss:$16 sps:$4 sm:$0xff]   ;;  %v3491_v11 = vld [vmem:[%s5122_s1 + $0x228] ss:$16 sps:$4 sm:$0xff]   ;;  %v3496_v12 = vld [vmem:[%s5122_s1 + $0x244] ss:$16 sps:$4 sm:$0xff]  }
  0x1a   :  { %v3499_v13 = vld [vmem:[%s5122_s1 + $0x24c] ss:$16 sps:$4 sm:$0xff]   ;;  %v3494_v14 = vld [vmem:[%s5122_s1 + $0x240] ss:$16 sps:$4 sm:$0xff]   ;;  %v3497_v15 = vld [vmem:[%s5122_s1 + $0x248] ss:$16 sps:$4 sm:$0xff]  }
  0x1b   :  { %1658 = vmatpush1.bf16.msra.mxu0 %v3426_v26  ;;  %1830 = vmatpush1.bf16.msra.mxu1 %v3427_v27  ;;  %v3502_v16 = vld [vmem:[%s5122_s1 + $0x264] ss:$16 sps:$4 sm:$0xff]   ;;  %v3505_v17 = vld [vmem:[%s5122_s1 + $0x26c] ss:$16 sps:$4 sm:$0xff]   ;;  %v3500_v18 = vld [vmem:[%s5122_s1 + $0x260] ss:$16 sps:$4 sm:$0xff]  }
  0x1c   :  { %1659 = vmatprep.subr.bf16.mxu0 %v3428_v28  ;;  %1831 = vmatprep.subr.bf16.mxu1 %v3430_v29  ;;  %v3503_v19 = vld [vmem:[%s5122_s1 + $0x268] ss:$16 sps:$4 sm:$0xff]   ;;  %v3508_v20 = vld [vmem:[%s5122_s1 + $0x284] ss:$16 sps:$4 sm:$0xff]   ;;  %v3511_v21 = vld [vmem:[%s5122_s1 + $0x28c] ss:$16 sps:$4 sm:$0xff]  }
  0x1d   :  { %v3506_v22 = vld [vmem:[%s5122_s1 + $0x280] ss:$16 sps:$4 sm:$0xff]   ;;  %v3509_v23 = vld [vmem:[%s5122_s1 + $0x288] ss:$16 sps:$4 sm:$0xff]   ;;  %v3514_v24 = vld [vmem:[%s5122_s1 + $0x2a4] ss:$16 sps:$4 sm:$0xff]  }
  0x1e   :  { %v3517_v25 = vld [vmem:[%s5122_s1 + $0x2ac] ss:$16 sps:$4 sm:$0xff]   ;;  %v3512_v26 = vld [vmem:[%s5122_s1 + $0x2a0] ss:$16 sps:$4 sm:$0xff]   ;;  %v3515_v27 = vld [vmem:[%s5122_s1 + $0x2a8] ss:$16 sps:$4 sm:$0xff]  }
  0x1f   :  { %1660 = vmatpush1.bf16.msra.mxu0 %v3432_v30  ;;  %1832 = vmatpush1.bf16.msra.mxu1 %v3433_v31  ;;  %v3520_v28 = vld [vmem:[%s5122_s1 + $0x2c4] ss:$16 sps:$4 sm:$0xff]   ;;  %v3523_v29 = vld [vmem:[%s5122_s1 + $0x2cc] ss:$16 sps:$4 sm:$0xff]   ;;  %v3539_v46 = vld [vmem:[%s5122_s1 + $0x328] ss:$16 sps:$4 sm:$0xff]  }
  0x20   :  { %1661 = vmatprep.subr.bf16.mxu0 %v3434_v32  ;;  %1833 = vmatprep.subr.bf16.mxu1 %v3436_v33  ;;  %v4239_v30 = vld [vmem:[%s5123_s0 + $0x8] sm:$0xff]  ;;  %v3518_v32 = vld [vmem:[%s5122_s1 + $0x2c0] ss:$16 sps:$4 sm:$0xff]   ;;  %v3544_v47 = vld [vmem:[%s5122_s1 + $0x344] ss:$16 sps:$4 sm:$0xff]  }
  0x21   :  { %v4244_v31 = vld [vmem:[%s5123_s0 + $0x28] sm:$0xff] }
  0x22   :  { %v3521_v33 = vld [vmem:[%s5122_s1 + $0x2c8] ss:$16 sps:$4 sm:$0xff]  }
  0x23   :  { %1662 = vmatpush1.bf16.msra.mxu0 %v3438_v34  ;;  %1834 = vmatpush1.bf16.msra.mxu1 %v3439_v35  ;;  %v2904_v34 = vcombine.high %v4239_v30, %v4244_v31  ;;  %v3526_v35 = vld [vmem:[%s5122_s1 + $0x2e4] ss:$16 sps:$4 sm:$0xff]   ;;  %v3545_v50 = vld [vmem:[%s5122_s1 + $0x348] ss:$16 sps:$4 sm:$0xff]  }
  0x24   :  { %1663 = vmatprep.subr.bf16.mxu0 %v3440_v36  ;;  %1835 = vmatprep.subr.bf16.mxu1 %v3442_v37  ;;  %v3529_v36 = vld [vmem:[%s5122_s1 + $0x2ec] ss:$16 sps:$4 sm:$0xff]   ;;  %v3524_v37 = vld [vmem:[%s5122_s1 + $0x2e0] ss:$16 sps:$4 sm:$0xff]  }
  0x27   :  { %1664 = vmatpush1.bf16.msra.mxu0 %v3444_v38  ;;  %1836 = vmatpush1.bf16.msra.mxu1 %v3445_v39  ;;  %v3527_v38 = vld [vmem:[%s5122_s1 + $0x2e8] ss:$16 sps:$4 sm:$0xff]   ;;  %v3532_v39 = vld [vmem:[%s5122_s1 + $0x304] ss:$16 sps:$4 sm:$0xff]  }
  0x28   :  { %1665 = vmatprep.subr.bf16.mxu0 %v3446_v40  ;;  %1837 = vmatprep.subr.bf16.mxu1 %v3448_v41  ;;  %v3535_v40 = vld [vmem:[%s5122_s1 + $0x30c] ss:$16 sps:$4 sm:$0xff]   ;;  %v3530_v41 = vld [vmem:[%s5122_s1 + $0x300] ss:$16 sps:$4 sm:$0xff]  }
  0x2b   :  { %1666 = vmatpush1.bf16.msra.mxu0 %v3450_v42  ;;  %1838 = vmatpush1.bf16.msra.mxu1 %v3451_v43  ;;  %v3533_v42 = vld [vmem:[%s5122_s1 + $0x308] ss:$16 sps:$4 sm:$0xff]   ;;  %v3538_v43 = vld [vmem:[%s5122_s1 + $0x324] ss:$16 sps:$4 sm:$0xff]  }
  0x2c   :  { %1667 = vmatprep.subr.bf16.mxu0 %v3452_v44  ;;  %1839 = vmatprep.subr.bf16.mxu1 %v3454_v45  ;;  %v3541_v44 = vld [vmem:[%s5122_s1 + $0x32c] ss:$16 sps:$4 sm:$0xff]   ;;  %v3536_v45 = vld [vmem:[%s5122_s1 + $0x320] ss:$16 sps:$4 sm:$0xff]  }
  0x2f   :  { %1668 = vmatpush1.bf16.msra.mxu0 %v3456_v48  ;;  %1840 = vmatpush1.bf16.msra.mxu1 %v3457_v49  ;;  %v3547_v48 = vld [vmem:[%s5122_s1 + $0x34c] ss:$16 sps:$4 sm:$0xff]   ;;  %v3542_v49 = vld [vmem:[%s5122_s1 + $0x340] ss:$16 sps:$4 sm:$0xff]  }
  0x30   :  { %1669 = vmatprep.subr.bf16.mxu0 %v3458_v51  ;;  %1841 = vmatprep.subr.bf16.mxu1 %v3460_v52  ;;  %v3550_v51 = vld [vmem:[%s5122_s1 + $0x364] ss:$16 sps:$4 sm:$0xff]   ;;  %v3553_v52 = vld [vmem:[%s5122_s1 + $0x36c] ss:$16 sps:$4 sm:$0xff]  }
  0x33   :  { %1670 = vmatpush1.bf16.msra.mxu0 %v3462_v53  ;;  %1842 = vmatpush1.bf16.msra.mxu1 %v3463_v54  ;;  %v3548_v53 = vld [vmem:[%s5122_s1 + $0x360] ss:$16 sps:$4 sm:$0xff]   ;;  %v3551_v54 = vld [vmem:[%s5122_s1 + $0x368] ss:$16 sps:$4 sm:$0xff]  }
  0x34   :  { %1671 = vmatprep.subr.bf16.mxu0 %v3464_v55  ;;  %1843 = vmatprep.subr.bf16.mxu1 %v3466_v56  ;;  %v3556_v55 = vld [vmem:[%s5122_s1 + $0x384] ss:$16 sps:$4 sm:$0xff]   ;;  %v3559_v56 = vld [vmem:[%s5122_s1 + $0x38c] ss:$16 sps:$4 sm:$0xff]  }
  0x37   :  { %1672 = vmatpush1.bf16.msra.mxu0 %v3468_v57  ;;  %1844 = vmatpush1.bf16.msra.mxu1 %v3469_v58  ;;  %v3554_v57 = vld [vmem:[%s5122_s1 + $0x380] ss:$16 sps:$4 sm:$0xff]   ;;  %v3557_v58 = vld [vmem:[%s5122_s1 + $0x388] ss:$16 sps:$4 sm:$0xff]  }
  0x38   :  { %1673 = vmatprep.subr.bf16.mxu0 %v3470_v59  ;;  %1845 = vmatprep.subr.bf16.mxu1 %v3472_v60  ;;  %v3562_v59 = vld [vmem:[%s5122_s1 + $0x3a4] ss:$16 sps:$4 sm:$0xff]   ;;  %v3565_v60 = vld [vmem:[%s5122_s1 + $0x3ac] ss:$16 sps:$4 sm:$0xff]  }
  0x3b   :  { %1674 = vmatpush1.bf16.msra.mxu0 %v3474_v61  ;;  %1846 = vmatpush1.bf16.msra.mxu1 %v3475_v62  ;;  %v3560_v61 = vld [vmem:[%s5122_s1 + $0x3a0] ss:$16 sps:$4 sm:$0xff]   ;;  %v3563_v62 = vld [vmem:[%s5122_s1 + $0x3a8] ss:$16 sps:$4 sm:$0xff]  }
  0x3c   :  { %1675 = vmatprep.subr.bf16.mxu0 %v3476_v63  ;;  %1847 = vmatprep.subr.bf16.mxu1 %v3478_v0  ;;  %v3568_v63 = vld [vmem:[%s5122_s1 + $0x3c4] ss:$16 sps:$4 sm:$0xff]   ;;  %v3571_v0 = vld [vmem:[%s5122_s1 + $0x3cc] ss:$16 sps:$4 sm:$0xff]  }
  0x3f   :  { %1676 = vmatpush1.bf16.msra.mxu0 %v3480_v1  ;;  %1848 = vmatpush1.bf16.msra.mxu1 %v3481_v2  ;;  %v3566_v1 = vld [vmem:[%s5122_s1 + $0x3c0] ss:$16 sps:$4 sm:$0xff]   ;;  %v3569_v2 = vld [vmem:[%s5122_s1 + $0x3c8] ss:$16 sps:$4 sm:$0xff]  }
  0x40   :  { %1688 = vmatprep.subr.bf16.mxu0 %v3484_v3  ;;  %1860 = vmatprep.subr.bf16.mxu1 %v3487_v4  ;;  %v3574_v3 = vld [vmem:[%s5122_s1 + $0x3e4] ss:$16 sps:$4 sm:$0xff]   ;;  %v3577_v4 = vld [vmem:[%s5122_s1 + $0x3ec] ss:$16 sps:$4 sm:$0xff]  }
  0x42   :  { %1678 = vmatmul.mubr.bf16.vlgmr.msra.gmra.mrb[0].mxu0 %v2901_v5  ;;  %1850 = vmatmul.mubr.bf16.vlgmr.msra.gmra.mrb[0].mxu1 %v2901_v5  ;;  %v3572_v5 = vld [vmem:[%s5122_s1 + $0x3e0] ss:$16 sps:$4 sm:$0xff]  }
  0x43   :  { %1689 = vmatpush1.bf16.msra.mxu0 %v3482_v6  ;;  %1861 = vmatpush1.bf16.msra.mxu1 %v3485_v7  ;;  %v3575_v6 = vld [vmem:[%s5122_s1 + $0x3e8] ss:$16 sps:$4 sm:$0xff]   ;;  %v3580_v7 = vld [vmem:[%s5122_s1 + $0x404] ss:$16 sps:$4 sm:$0xff]  }
  0x44   :  { %1690 = vmatprep.subr.bf16.mxu0 %v3490_v8  ;;  %1862 = vmatprep.subr.bf16.mxu1 %v3493_v9  ;;  %v3583_v8 = vld [vmem:[%s5122_s1 + $0x40c] ss:$16 sps:$4 sm:$0xff]   ;;  %v2903_v9 = vcombine.low %v4239_v30, %v4244_v31  ;;  %v3605_v30 = vld [vmem:[%s5122_s1 + $0x488] ss:$16 sps:$4 sm:$0xff]   ;;  %v3610_v31 = vld [vmem:[%s5122_s1 + $0x4a4] ss:$16 sps:$4 sm:$0xff]  }
  0x45   :  { %1720 = vmatprep.mubr.bf16.mxu0 %v2904_v34  ;;  %1892 = vmatprep.mubr.bf16.mxu1 %v2904_v34  ;;  %v3611_v34 = vld [vmem:[%s5122_s1 + $0x4a8] ss:$16 sps:$4 sm:$0xff]  }
  0x47   :  { %1691 = vmatpush1.bf16.msra.mxu0 %v3488_v10  ;;  %1863 = vmatpush1.bf16.msra.mxu1 %v3491_v11  ;;  %v3578_v10 = vld [vmem:[%s5122_s1 + $0x400] ss:$16 sps:$4 sm:$0xff]   ;;  %v3581_v11 = vld [vmem:[%s5122_s1 + $0x408] ss:$16 sps:$4 sm:$0xff]  }
  0x48   :  { %1692 = vmatprep.subr.bf16.mxu0 %v3496_v12  ;;  %1864 = vmatprep.subr.bf16.mxu1 %v3499_v13  ;;  %v3586_v12 = vld [vmem:[%s5122_s1 + $0x424] ss:$16 sps:$4 sm:$0xff]   ;;  %v3589_v13 = vld [vmem:[%s5122_s1 + $0x42c] ss:$16 sps:$4 sm:$0xff]  }
  0x4b   :  { %1693 = vmatpush1.bf16.msra.mxu0 %v3494_v14  ;;  %1865 = vmatpush1.bf16.msra.mxu1 %v3497_v15  ;;  %v4385_v14 = vld [vmem:[%s5123_s0 + $0x10] sm:$0xff] }
  0x4c   :  { %1694 = vmatprep.subr.bf16.mxu0 %v3502_v16  ;;  %1866 = vmatprep.subr.bf16.mxu1 %v3505_v17  ;;  %v4390_v15 = vld [vmem:[%s5123_s0 + $0x30] sm:$0xff] }
  0x4d   :  { %v2906_v16 = vcombine.high %v4385_v14, %v4390_v15  ;;  %v3584_v17 = vld [vmem:[%s5122_s1 + $0x420] ss:$16 sps:$4 sm:$0xff]  }
  0x4f   :  { %1695 = vmatpush1.bf16.msra.mxu0 %v3500_v18  ;;  %1867 = vmatpush1.bf16.msra.mxu1 %v3503_v19  ;;  %v3587_v18 = vld [vmem:[%s5122_s1 + $0x428] ss:$16 sps:$4 sm:$0xff]   ;;  %v3592_v19 = vld [vmem:[%s5122_s1 + $0x444] ss:$16 sps:$4 sm:$0xff]  }
  0x50   :  { %1696 = vmatprep.subr.bf16.mxu0 %v3508_v20  ;;  %1868 = vmatprep.subr.bf16.mxu1 %v3511_v21  ;;  %v3595_v20 = vld [vmem:[%s5122_s1 + $0x44c] ss:$16 sps:$4 sm:$0xff]   ;;  %v3590_v21 = vld [vmem:[%s5122_s1 + $0x440] ss:$16 sps:$4 sm:$0xff]  }
  0x53   :  { %1697 = vmatpush1.bf16.msra.mxu0 %v3506_v22  ;;  %1869 = vmatpush1.bf16.msra.mxu1 %v3509_v23  ;;  %v3593_v22 = vld [vmem:[%s5122_s1 + $0x448] ss:$16 sps:$4 sm:$0xff]   ;;  %v3598_v23 = vld [vmem:[%s5122_s1 + $0x464] ss:$16 sps:$4 sm:$0xff]  }
  0x54   :  { %1698 = vmatprep.subr.bf16.mxu0 %v3514_v24  ;;  %1870 = vmatprep.subr.bf16.mxu1 %v3517_v25  ;;  %v3601_v24 = vld [vmem:[%s5122_s1 + $0x46c] ss:$16 sps:$4 sm:$0xff]   ;;  %v3596_v25 = vld [vmem:[%s5122_s1 + $0x460] ss:$16 sps:$4 sm:$0xff]  }
  0x57   :  { %1699 = vmatpush1.bf16.msra.mxu0 %v3512_v26  ;;  %1871 = vmatpush1.bf16.msra.mxu1 %v3515_v27  ;;  %v3599_v26 = vld [vmem:[%s5122_s1 + $0x468] ss:$16 sps:$4 sm:$0xff]   ;;  %v3604_v27 = vld [vmem:[%s5122_s1 + $0x484] ss:$16 sps:$4 sm:$0xff]  }
  0x58   :  { %1700 = vmatprep.subr.bf16.mxu0 %v3520_v28  ;;  %1872 = vmatprep.subr.bf16.mxu1 %v3523_v29  ;;  %v3607_v28 = vld [vmem:[%s5122_s1 + $0x48c] ss:$16 sps:$4 sm:$0xff]   ;;  %v3602_v29 = vld [vmem:[%s5122_s1 + $0x480] ss:$16 sps:$4 sm:$0xff]  }
  0x5b   :  { %1701 = vmatpush1.bf16.msra.mxu0 %v3518_v32  ;;  %1873 = vmatpush1.bf16.msra.mxu1 %v3521_v33  ;;  %v3613_v32 = vld [vmem:[%s5122_s1 + $0x4ac] ss:$16 sps:$4 sm:$0xff]   ;;  %v3608_v33 = vld [vmem:[%s5122_s1 + $0x4a0] ss:$16 sps:$4 sm:$0xff]  }
  0x5c   :  { %1702 = vmatprep.subr.bf16.mxu0 %v3526_v35  ;;  %1874 = vmatprep.subr.bf16.mxu1 %v3529_v36  ;;  %v3616_v35 = vld [vmem:[%s5122_s1 + $0x4c4] ss:$16 sps:$4 sm:$0xff]   ;;  %v3619_v36 = vld [vmem:[%s5122_s1 + $0x4cc] ss:$16 sps:$4 sm:$0xff]  }
  0x5f   :  { %1703 = vmatpush1.bf16.msra.mxu0 %v3524_v37  ;;  %1875 = vmatpush1.bf16.msra.mxu1 %v3527_v38  ;;  %v3614_v37 = vld [vmem:[%s5122_s1 + $0x4c0] ss:$16 sps:$4 sm:$0xff]   ;;  %v3617_v38 = vld [vmem:[%s5122_s1 + $0x4c8] ss:$16 sps:$4 sm:$0xff]  }
  0x60   :  { %1704 = vmatprep.subr.bf16.mxu0 %v3532_v39  ;;  %1876 = vmatprep.subr.bf16.mxu1 %v3535_v40  ;;  %v3622_v39 = vld [vmem:[%s5122_s1 + $0x4e4] ss:$16 sps:$4 sm:$0xff]   ;;  %v3625_v40 = vld [vmem:[%s5122_s1 + $0x4ec] ss:$16 sps:$4 sm:$0xff]  }
  0x63   :  { %1705 = vmatpush1.bf16.msra.mxu0 %v3530_v41  ;;  %1877 = vmatpush1.bf16.msra.mxu1 %v3533_v42  ;;  %v3620_v41 = vld [vmem:[%s5122_s1 + $0x4e0] ss:$16 sps:$4 sm:$0xff]   ;;  %v3623_v42 = vld [vmem:[%s5122_s1 + $0x4e8] ss:$16 sps:$4 sm:$0xff]  }
  0x64   :  { %1706 = vmatprep.subr.bf16.mxu0 %v3538_v43  ;;  %1878 = vmatprep.subr.bf16.mxu1 %v3541_v44  ;;  %v3628_v43 = vld [vmem:[%s5122_s1 + $0x504] ss:$16 sps:$4 sm:$0xff]   ;;  %v3631_v44 = vld [vmem:[%s5122_s1 + $0x50c] ss:$16 sps:$4 sm:$0xff]  }
  0x67   :  { %1707 = vmatpush1.bf16.msra.mxu0 %v3536_v45  ;;  %1879 = vmatpush1.bf16.msra.mxu1 %v3539_v46  ;;  %v3626_v45 = vld [vmem:[%s5122_s1 + $0x500] ss:$16 sps:$4 sm:$0xff]   ;;  %v3629_v46 = vld [vmem:[%s5122_s1 + $0x508] ss:$16 sps:$4 sm:$0xff]  }
  0x68   :  { %1708 = vmatprep.subr.bf16.mxu0 %v3544_v47  ;;  %1880 = vmatprep.subr.bf16.mxu1 %v3547_v48  ;;  %v3634_v47 = vld [vmem:[%s5122_s1 + $0x524] ss:$16 sps:$4 sm:$0xff]   ;;  %v3637_v48 = vld [vmem:[%s5122_s1 + $0x52c] ss:$16 sps:$4 sm:$0xff]  }
  0x6b   :  { %1709 = vmatpush1.bf16.msra.mxu0 %v3542_v49  ;;  %1881 = vmatpush1.bf16.msra.mxu1 %v3545_v50  ;;  %v3632_v49 = vld [vmem:[%s5122_s1 + $0x520] ss:$16 sps:$4 sm:$0xff]   ;;  %v3635_v50 = vld [vmem:[%s5122_s1 + $0x528] ss:$16 sps:$4 sm:$0xff]  }
  0x6c   :  { %1710 = vmatprep.subr.bf16.mxu0 %v3550_v51  ;;  %1882 = vmatprep.subr.bf16.mxu1 %v3553_v52  ;;  %v3640_v51 = vld [vmem:[%s5122_s1 + $0x544] ss:$16 sps:$4 sm:$0xff]   ;;  %v3643_v52 = vld [vmem:[%s5122_s1 + $0x54c] ss:$16 sps:$4 sm:$0xff]  }
  0x6f   :  { %1711 = vmatpush1.bf16.msra.mxu0 %v3548_v53  ;;  %1883 = vmatpush1.bf16.msra.mxu1 %v3551_v54  ;;  %v3638_v53 = vld [vmem:[%s5122_s1 + $0x540] ss:$16 sps:$4 sm:$0xff]   ;;  %v3641_v54 = vld [vmem:[%s5122_s1 + $0x548] ss:$16 sps:$4 sm:$0xff]  }
  0x70   :  { %1712 = vmatprep.subr.bf16.mxu0 %v3556_v55  ;;  %1884 = vmatprep.subr.bf16.mxu1 %v3559_v56  ;;  %v3646_v55 = vld [vmem:[%s5122_s1 + $0x564] ss:$16 sps:$4 sm:$0xff]   ;;  %v3649_v56 = vld [vmem:[%s5122_s1 + $0x56c] ss:$16 sps:$4 sm:$0xff]  }
  0x73   :  { %1713 = vmatpush1.bf16.msra.mxu0 %v3554_v57  ;;  %1885 = vmatpush1.bf16.msra.mxu1 %v3557_v58  ;;  %v3644_v57 = vld [vmem:[%s5122_s1 + $0x560] ss:$16 sps:$4 sm:$0xff]   ;;  %v3647_v58 = vld [vmem:[%s5122_s1 + $0x568] ss:$16 sps:$4 sm:$0xff]  }
  0x74   :  { %1714 = vmatprep.subr.bf16.mxu0 %v3562_v59  ;;  %1886 = vmatprep.subr.bf16.mxu1 %v3565_v60  ;;  %v3652_v59 = vld [vmem:[%s5122_s1 + $0x584] ss:$16 sps:$4 sm:$0xff]   ;;  %v3655_v60 = vld [vmem:[%s5122_s1 + $0x58c] ss:$16 sps:$4 sm:$0xff]  }
  0x77   :  { %1715 = vmatpush1.bf16.msra.mxu0 %v3560_v61  ;;  %1887 = vmatpush1.bf16.msra.mxu1 %v3563_v62  ;;  %v3650_v61 = vld [vmem:[%s5122_s1 + $0x580] ss:$16 sps:$4 sm:$0xff]   ;;  %v3653_v62 = vld [vmem:[%s5122_s1 + $0x588] ss:$16 sps:$4 sm:$0xff]  }
  0x78   :  { %1716 = vmatprep.subr.bf16.mxu0 %v3568_v63  ;;  %1888 = vmatprep.subr.bf16.mxu1 %v3571_v0  ;;  %v3658_v63 = vld [vmem:[%s5122_s1 + $0x5a4] ss:$16 sps:$4 sm:$0xff]   ;;  %v3661_v0 = vld [vmem:[%s5122_s1 + $0x5ac] ss:$16 sps:$4 sm:$0xff]  }
  0x7b   :  { %1717 = vmatpush1.bf16.msra.mxu0 %v3566_v1  ;;  %1889 = vmatpush1.bf16.msra.mxu1 %v3569_v2  ;;  %v3656_v1 = vld [vmem:[%s5122_s1 + $0x5a0] ss:$16 sps:$4 sm:$0xff]   ;;  %v3659_v2 = vld [vmem:[%s5122_s1 + $0x5a8] ss:$16 sps:$4 sm:$0xff]  }
  0x7c   :  { %1718 = vmatprep.subr.bf16.mxu0 %v3574_v3  ;;  %1890 = vmatprep.subr.bf16.mxu1 %v3577_v4  ;;  %v3664_v3 = vld [vmem:[%s5122_s1 + $0x5c4] ss:$16 sps:$4 sm:$0xff]   ;;  %v3667_v4 = vld [vmem:[%s5122_s1 + $0x5cc] ss:$16 sps:$4 sm:$0xff]  }
  0x7f   :  { %1719 = vmatpush1.bf16.msra.mxu0 %v3572_v5  ;;  %1891 = vmatpush1.bf16.msra.mxu1 %v3575_v6  ;;  %v3662_v5 = vld [vmem:[%s5122_s1 + $0x5c0] ss:$16 sps:$4 sm:$0xff]   ;;  %v3665_v6 = vld [vmem:[%s5122_s1 + $0x5c8] ss:$16 sps:$4 sm:$0xff]  }
  0x80   :  { %1731 = vmatprep.subr.bf16.mxu0 %v3580_v7  ;;  %1903 = vmatprep.subr.bf16.mxu1 %v3583_v8  ;;  %v3670_v7 = vld [vmem:[%s5122_s1 + $0x5e4] ss:$16 sps:$4 sm:$0xff]   ;;  %v3673_v8 = vld [vmem:[%s5122_s1 + $0x5ec] ss:$16 sps:$4 sm:$0xff]  }
  0x82   :  { %1721 = vmatmul.mubr.bf16.vlgmr.msra.gmra.mrb[0].mxu0 %v2903_v9  ;;  %1893 = vmatmul.mubr.bf16.vlgmr.msra.gmra.mrb[0].mxu1 %v2903_v9  ;;  %v3668_v9 = vld [vmem:[%s5122_s1 + $0x5e0] ss:$16 sps:$4 sm:$0xff]  }
  0x83   :  { %1732 = vmatpush1.bf16.msra.mxu0 %v3578_v10  ;;  %1904 = vmatpush1.bf16.msra.mxu1 %v3581_v11  ;;  %v3671_v10 = vld [vmem:[%s5122_s1 + $0x5e8] ss:$16 sps:$4 sm:$0xff]   ;;  %v3676_v11 = vld [vmem:[%s5122_s1 + $0x604] ss:$16 sps:$4 sm:$0xff]  }
  0x84   :  { %1733 = vmatprep.subr.bf16.mxu0 %v3586_v12  ;;  %1905 = vmatprep.subr.bf16.mxu1 %v3589_v13  ;;  %v3679_v12 = vld [vmem:[%s5122_s1 + $0x60c] ss:$16 sps:$4 sm:$0xff]   ;;  %v3674_v13 = vld [vmem:[%s5122_s1 + $0x600] ss:$16 sps:$4 sm:$0xff]  }
  0x85   :  { %1763 = vmatprep.mubr.bf16.mxu0 %v2906_v16  ;;  %1935 = vmatprep.mubr.bf16.mxu1 %v2906_v16  ;;  %v3677_v16 = vld [vmem:[%s5122_s1 + $0x608] ss:$16 sps:$4 sm:$0xff]  }
  0x87   :  { %1734 = vmatpush1.bf16.msra.mxu0 %v3584_v17  ;;  %1906 = vmatpush1.bf16.msra.mxu1 %v3587_v18  ;;  %v2905_v17 = vcombine.low %v4385_v14, %v4390_v15  ;;  %v3682_v18 = vld [vmem:[%s5122_s1 + $0x624] ss:$16 sps:$4 sm:$0xff]   ;;  %v3685_v14 = vld [vmem:[%s5122_s1 + $0x62c] ss:$16 sps:$4 sm:$0xff]   ;;  %v3680_v15 = vld [vmem:[%s5122_s1 + $0x620] ss:$16 sps:$4 sm:$0xff]  }
  0x88   :  { %1735 = vmatprep.subr.bf16.mxu0 %v3592_v19  ;;  %1907 = vmatprep.subr.bf16.mxu1 %v3595_v20  ;;  %v4588_v19 = vld [vmem:[%s5123_s0 + $0x18] sm:$0xff] }
  0x89   :  { %v4593_v20 = vld [vmem:[%s5123_s0 + $0x38] sm:$0xff] }
  0x8b   :  { %1736 = vmatpush1.bf16.msra.mxu0 %v3590_v21  ;;  %1908 = vmatpush1.bf16.msra.mxu1 %v3593_v22  ;;  %v3683_v21 = vld [vmem:[%s5122_s1 + $0x628] ss:$16 sps:$4 sm:$0xff]   ;;  %v2908_v22 = vcombine.high %v4588_v19, %v4593_v20 }
  0x8c   :  { %1737 = vmatprep.subr.bf16.mxu0 %v3598_v23  ;;  %1909 = vmatprep.subr.bf16.mxu1 %v3601_v24  ;;  %v3688_v23 = vld [vmem:[%s5122_s1 + $0x644] ss:$16 sps:$4 sm:$0xff]   ;;  %v3691_v24 = vld [vmem:[%s5122_s1 + $0x64c] ss:$16 sps:$4 sm:$0xff]  }
  0x8f   :  { %1738 = vmatpush1.bf16.msra.mxu0 %v3596_v25  ;;  %1910 = vmatpush1.bf16.msra.mxu1 %v3599_v26  ;;  %v3686_v25 = vld [vmem:[%s5122_s1 + $0x640] ss:$16 sps:$4 sm:$0xff]   ;;  %v3689_v26 = vld [vmem:[%s5122_s1 + $0x648] ss:$16 sps:$4 sm:$0xff]  }
  0x90   :  { %1739 = vmatprep.subr.bf16.mxu0 %v3604_v27  ;;  %1911 = vmatprep.subr.bf16.mxu1 %v3607_v28  ;;  %v3694_v27 = vld [vmem:[%s5122_s1 + $0x664] ss:$16 sps:$4 sm:$0xff]   ;;  %v3697_v28 = vld [vmem:[%s5122_s1 + $0x66c] ss:$16 sps:$4 sm:$0xff]  }
  0x93   :  { %1740 = vmatpush1.bf16.msra.mxu0 %v3602_v29  ;;  %1912 = vmatpush1.bf16.msra.mxu1 %v3605_v30  ;;  %v3692_v29 = vld [vmem:[%s5122_s1 + $0x660] ss:$16 sps:$4 sm:$0xff]   ;;  %v3695_v30 = vld [vmem:[%s5122_s1 + $0x668] ss:$16 sps:$4 sm:$0xff]  }
  0x94   :  { %1741 = vmatprep.subr.bf16.mxu0 %v3610_v31  ;;  %1913 = vmatprep.subr.bf16.mxu1 %v3613_v32  ;;  %v3700_v31 = vld [vmem:[%s5122_s1 + $0x684] ss:$16 sps:$4 sm:$0xff]   ;;  %v3703_v32 = vld [vmem:[%s5122_s1 + $0x68c] ss:$16 sps:$4 sm:$0xff]  }
  0x97   :  { %1742 = vmatpush1.bf16.msra.mxu0 %v3608_v33  ;;  %1914 = vmatpush1.bf16.msra.mxu1 %v3611_v34  ;;  %v3698_v33 = vld [vmem:[%s5122_s1 + $0x680] ss:$16 sps:$4 sm:$0xff]   ;;  %v3701_v34 = vld [vmem:[%s5122_s1 + $0x688] ss:$16 sps:$4 sm:$0xff]  }
  0x98   :  { %1743 = vmatprep.subr.bf16.mxu0 %v3616_v35  ;;  %1915 = vmatprep.subr.bf16.mxu1 %v3619_v36  ;;  %v3706_v35 = vld [vmem:[%s5122_s1 + $0x6a4] ss:$16 sps:$4 sm:$0xff]   ;;  %v3709_v36 = vld [vmem:[%s5122_s1 + $0x6ac] ss:$16 sps:$4 sm:$0xff]  }
  0x9b   :  { %1744 = vmatpush1.bf16.msra.mxu0 %v3614_v37  ;;  %1916 = vmatpush1.bf16.msra.mxu1 %v3617_v38  ;;  %v3704_v37 = vld [vmem:[%s5122_s1 + $0x6a0] ss:$16 sps:$4 sm:$0xff]   ;;  %v3707_v38 = vld [vmem:[%s5122_s1 + $0x6a8] ss:$16 sps:$4 sm:$0xff]  }
  0x9c   :  { %1745 = vmatprep.subr.bf16.mxu0 %v3622_v39  ;;  %1917 = vmatprep.subr.bf16.mxu1 %v3625_v40  ;;  %v3712_v39 = vld [vmem:[%s5122_s1 + $0x6c4] ss:$16 sps:$4 sm:$0xff]   ;;  %v3715_v40 = vld [vmem:[%s5122_s1 + $0x6cc] ss:$16 sps:$4 sm:$0xff]  }
  0x9f   :  { %1746 = vmatpush1.bf16.msra.mxu0 %v3620_v41  ;;  %1918 = vmatpush1.bf16.msra.mxu1 %v3623_v42  ;;  %v3710_v41 = vld [vmem:[%s5122_s1 + $0x6c0] ss:$16 sps:$4 sm:$0xff]   ;;  %v3713_v42 = vld [vmem:[%s5122_s1 + $0x6c8] ss:$16 sps:$4 sm:$0xff]  }
  0xa0   :  { %1747 = vmatprep.subr.bf16.mxu0 %v3628_v43  ;;  %1919 = vmatprep.subr.bf16.mxu1 %v3631_v44  ;;  %v3718_v43 = vld [vmem:[%s5122_s1 + $0x6e4] ss:$16 sps:$4 sm:$0xff]   ;;  %v3721_v44 = vld [vmem:[%s5122_s1 + $0x6ec] ss:$16 sps:$4 sm:$0xff]  }
  0xa3   :  { %1748 = vmatpush1.bf16.msra.mxu0 %v3626_v45  ;;  %1920 = vmatpush1.bf16.msra.mxu1 %v3629_v46  ;;  %v3716_v45 = vld [vmem:[%s5122_s1 + $0x6e0] ss:$16 sps:$4 sm:$0xff]   ;;  %v3719_v46 = vld [vmem:[%s5122_s1 + $0x6e8] ss:$16 sps:$4 sm:$0xff]  }
  0xa4   :  { %1749 = vmatprep.subr.bf16.mxu0 %v3634_v47  ;;  %1921 = vmatprep.subr.bf16.mxu1 %v3637_v48  ;;  %v3724_v47 = vld [vmem:[%s5122_s1 + $0x704] ss:$16 sps:$4 sm:$0xff]   ;;  %v3727_v48 = vld [vmem:[%s5122_s1 + $0x70c] ss:$16 sps:$4 sm:$0xff]  }
  0xa7   :  { %1750 = vmatpush1.bf16.msra.mxu0 %v3632_v49  ;;  %1922 = vmatpush1.bf16.msra.mxu1 %v3635_v50  ;;  %v3722_v49 = vld [vmem:[%s5122_s1 + $0x700] ss:$16 sps:$4 sm:$0xff]   ;;  %v3725_v50 = vld [vmem:[%s5122_s1 + $0x708] ss:$16 sps:$4 sm:$0xff]  }
  0xa8   :  { %1751 = vmatprep.subr.bf16.mxu0 %v3640_v51  ;;  %1923 = vmatprep.subr.bf16.mxu1 %v3643_v52  ;;  %v3730_v51 = vld [vmem:[%s5122_s1 + $0x724] ss:$16 sps:$4 sm:$0xff]   ;;  %v3733_v52 = vld [vmem:[%s5122_s1 + $0x72c] ss:$16 sps:$4 sm:$0xff]  }
  0xab   :  { %1752 = vmatpush1.bf16.msra.mxu0 %v3638_v53  ;;  %1924 = vmatpush1.bf16.msra.mxu1 %v3641_v54  ;;  %v3728_v53 = vld [vmem:[%s5122_s1 + $0x720] ss:$16 sps:$4 sm:$0xff]   ;;  %v3731_v54 = vld [vmem:[%s5122_s1 + $0x728] ss:$16 sps:$4 sm:$0xff]  }
  0xac   :  { %1753 = vmatprep.subr.bf16.mxu0 %v3646_v55  ;;  %1925 = vmatprep.subr.bf16.mxu1 %v3649_v56  ;;  %v3736_v55 = vld [vmem:[%s5122_s1 + $0x744] ss:$16 sps:$4 sm:$0xff]   ;;  %v3739_v56 = vld [vmem:[%s5122_s1 + $0x74c] ss:$16 sps:$4 sm:$0xff]  }
  0xaf   :  { %1754 = vmatpush1.bf16.msra.mxu0 %v3644_v57  ;;  %1926 = vmatpush1.bf16.msra.mxu1 %v3647_v58  ;;  %v3734_v57 = vld [vmem:[%s5122_s1 + $0x740] ss:$16 sps:$4 sm:$0xff]   ;;  %v3737_v58 = vld [vmem:[%s5122_s1 + $0x748] ss:$16 sps:$4 sm:$0xff]  }
  0xb0   :  { %1755 = vmatprep.subr.bf16.mxu0 %v3652_v59  ;;  %1927 = vmatprep.subr.bf16.mxu1 %v3655_v60  ;;  %v3742_v59 = vld [vmem:[%s5122_s1 + $0x764] ss:$16 sps:$4 sm:$0xff]   ;;  %v3745_v60 = vld [vmem:[%s5122_s1 + $0x76c] ss:$16 sps:$4 sm:$0xff]  }
  0xb3   :  { %1756 = vmatpush1.bf16.msra.mxu0 %v3650_v61  ;;  %1928 = vmatpush1.bf16.msra.mxu1 %v3653_v62  ;;  %v3740_v61 = vld [vmem:[%s5122_s1 + $0x760] ss:$16 sps:$4 sm:$0xff]   ;;  %v3743_v62 = vld [vmem:[%s5122_s1 + $0x768] ss:$16 sps:$4 sm:$0xff]  }
  0xb4   :  { %1757 = vmatprep.subr.bf16.mxu0 %v3658_v63  ;;  %1929 = vmatprep.subr.bf16.mxu1 %v3661_v0  ;;  %v3748_v63 = vld [vmem:[%s5122_s1 + $0x784] ss:$16 sps:$4 sm:$0xff]   ;;  %v3751_v0 = vld [vmem:[%s5122_s1 + $0x78c] ss:$16 sps:$4 sm:$0xff]  }
  0xb7   :  { %1758 = vmatpush1.bf16.msra.mxu0 %v3656_v1  ;;  %1930 = vmatpush1.bf16.msra.mxu1 %v3659_v2  ;;  %v3746_v1 = vld [vmem:[%s5122_s1 + $0x780] ss:$16 sps:$4 sm:$0xff]   ;;  %v3749_v2 = vld [vmem:[%s5122_s1 + $0x788] ss:$16 sps:$4 sm:$0xff]  }
  0xb8   :  { %1759 = vmatprep.subr.bf16.mxu0 %v3664_v3  ;;  %1931 = vmatprep.subr.bf16.mxu1 %v3667_v4  ;;  %v3754_v3 = vld [vmem:[%s5122_s1 + $0x7a4] ss:$16 sps:$4 sm:$0xff]   ;;  %v3757_v4 = vld [vmem:[%s5122_s1 + $0x7ac] ss:$16 sps:$4 sm:$0xff]  }
  0xbb   :  { %1760 = vmatpush1.bf16.msra.mxu0 %v3662_v5  ;;  %1932 = vmatpush1.bf16.msra.mxu1 %v3665_v6  ;;  %v3752_v5 = vld [vmem:[%s5122_s1 + $0x7a0] ss:$16 sps:$4 sm:$0xff]   ;;  %v3755_v6 = vld [vmem:[%s5122_s1 + $0x7a8] ss:$16 sps:$4 sm:$0xff]  }
  0xbc   :  { %1761 = vmatprep.subr.bf16.mxu0 %v3670_v7  ;;  %1933 = vmatprep.subr.bf16.mxu1 %v3673_v8  ;;  %v3760_v7 = vld [vmem:[%s5122_s1 + $0x7c4] ss:$16 sps:$4 sm:$0xff]   ;;  %v3763_v8 = vld [vmem:[%s5122_s1 + $0x7cc] ss:$16 sps:$4 sm:$0xff]  }
  0xbf   :  { %1762 = vmatpush1.bf16.msra.mxu0 %v3668_v9  ;;  %1934 = vmatpush1.bf16.msra.mxu1 %v3671_v10  ;;  %v3758_v9 = vld [vmem:[%s5122_s1 + $0x7c0] ss:$16 sps:$4 sm:$0xff]   ;;  %v3761_v10 = vld [vmem:[%s5122_s1 + $0x7c8] ss:$16 sps:$4 sm:$0xff]  }
  0xc0   :  { %1774 = vmatprep.subr.bf16.mxu0 %v3676_v11  ;;  %1946 = vmatprep.subr.bf16.mxu1 %v3679_v12  ;;  %v3766_v11 = vld [vmem:[%s5122_s1 + $0x7e4] ss:$16 sps:$4 sm:$0xff]   ;;  %v3769_v12 = vld [vmem:[%s5122_s1 + $0x7ec] ss:$16 sps:$4 sm:$0xff]  }
  0xc2   :  { %1764 = vmatmul.mubr.bf16.vlgmr.msra.gmra.mrb[0].mxu0 %v2905_v17  ;;  %1936 = vmatmul.mubr.bf16.vlgmr.msra.gmra.mrb[0].mxu1 %v2905_v17  ;;  %v3772_v17 = vld [vmem:[%s5124_s3 + $0x4] ss:$8 sps:$4 sm:$0xff]  }
  0xc3   :  { %1775 = vmatpush1.bf16.msra.mxu0 %v3674_v13  ;;  %1947 = vmatpush1.bf16.msra.mxu1 %v3677_v16  ;;  %v3764_v13 = vld [vmem:[%s5122_s1 + $0x7e0] ss:$16 sps:$4 sm:$0xff]   ;;  %v3767_v16 = vld [vmem:[%s5122_s1 + $0x7e8] ss:$16 sps:$4 sm:$0xff]  }
  0xc4   :  { %1776 = vmatprep.subr.bf16.mxu0 %v3682_v18  ;;  %1948 = vmatprep.subr.bf16.mxu1 %v3685_v14  ;;  %v2907_v18 = vcombine.low %v4588_v19, %v4593_v20  ;;  %v3770_v14 = vld [vmem:[%s5124_s3] ss:$8 sps:$4 sm:$0xff]   ;;  %v3778_v19 = vld [vmem:[%s5124_s3 + $0x24] ss:$8 sps:$4 sm:$0xff]  }
  0xc5   :  { %1806 = vmatprep.mubr.bf16.mxu0 %v2908_v22  ;;  %1978 = vmatprep.mubr.bf16.mxu1 %v2908_v22  ;;  %v3776_v20 = vld [vmem:[%s5124_s3 + $0x20] ss:$8 sps:$4 sm:$0xff]   ;;  %v3781_v22 = vld [vmem:[%s5124_s3 + $0x34] ss:$8 sps:$4 sm:$0xff]  }
  0xc7   :  { %1777 = vmatpush1.bf16.msra.mxu0 %v3680_v15  ;;  %1949 = vmatpush1.bf16.msra.mxu1 %v3683_v21  ;;  %v3775_v15 = vld [vmem:[%s5124_s3 + $0x14] ss:$8 sps:$4 sm:$0xff]   ;;  %v3773_v21 = vld [vmem:[%s5124_s3 + $0x10] ss:$8 sps:$4 sm:$0xff]  }
  0xc8   :  { %1778 = vmatprep.subr.bf16.mxu0 %v3688_v23  ;;  %1950 = vmatprep.subr.bf16.mxu1 %v3691_v24  ;;  %v3779_v23 = vld [vmem:[%s5124_s3 + $0x30] ss:$8 sps:$4 sm:$0xff]   ;;  %v3784_v24 = vld [vmem:[%s5124_s3 + $0x44] ss:$8 sps:$4 sm:$0xff]  }
  0xcb   :  { %1779 = vmatpush1.bf16.msra.mxu0 %v3686_v25  ;;  %1951 = vmatpush1.bf16.msra.mxu1 %v3689_v26  ;;  %v3782_v25 = vld [vmem:[%s5124_s3 + $0x40] ss:$8 sps:$4 sm:$0xff]   ;;  %v3787_v26 = vld [vmem:[%s5124_s3 + $0x54] ss:$8 sps:$4 sm:$0xff]  }
  0xcc   :  { %1780 = vmatprep.subr.bf16.mxu0 %v3694_v27  ;;  %1952 = vmatprep.subr.bf16.mxu1 %v3697_v28  ;;  %v3785_v27 = vld [vmem:[%s5124_s3 + $0x50] ss:$8 sps:$4 sm:$0xff]   ;;  %v3790_v28 = vld [vmem:[%s5124_s3 + $0x64] ss:$8 sps:$4 sm:$0xff]  }
  0xcf   :  { %1781 = vmatpush1.bf16.msra.mxu0 %v3692_v29  ;;  %1953 = vmatpush1.bf16.msra.mxu1 %v3695_v30  ;;  %v3788_v29 = vld [vmem:[%s5124_s3 + $0x60] ss:$8 sps:$4 sm:$0xff]   ;;  %v3793_v30 = vld [vmem:[%s5124_s3 + $0x74] ss:$8 sps:$4 sm:$0xff]  }
  0xd0   :  { %1782 = vmatprep.subr.bf16.mxu0 %v3700_v31  ;;  %1954 = vmatprep.subr.bf16.mxu1 %v3703_v32  ;;  %v3791_v31 = vld [vmem:[%s5124_s3 + $0x70] ss:$8 sps:$4 sm:$0xff]   ;;  %v3796_v32 = vld [vmem:[%s5124_s3 + $0x84] ss:$8 sps:$4 sm:$0xff]  }
  0xd3   :  { %1783 = vmatpush1.bf16.msra.mxu0 %v3698_v33  ;;  %1955 = vmatpush1.bf16.msra.mxu1 %v3701_v34  ;;  %v3794_v33 = vld [vmem:[%s5124_s3 + $0x80] ss:$8 sps:$4 sm:$0xff]   ;;  %v3799_v34 = vld [vmem:[%s5124_s3 + $0x94] ss:$8 sps:$4 sm:$0xff]  }
  0xd4   :  { %1784 = vmatprep.subr.bf16.mxu0 %v3706_v35  ;;  %1956 = vmatprep.subr.bf16.mxu1 %v3709_v36  ;;  %v3797_v35 = vld [vmem:[%s5124_s3 + $0x90] ss:$8 sps:$4 sm:$0xff]   ;;  %v3802_v36 = vld [vmem:[%s5124_s3 + $0xa4] ss:$8 sps:$4 sm:$0xff]  }
  0xd7   :  { %1785 = vmatpush1.bf16.msra.mxu0 %v3704_v37  ;;  %1957 = vmatpush1.bf16.msra.mxu1 %v3707_v38  ;;  %v3800_v37 = vld [vmem:[%s5124_s3 + $0xa0] ss:$8 sps:$4 sm:$0xff]   ;;  %v3805_v38 = vld [vmem:[%s5124_s3 + $0xb4] ss:$8 sps:$4 sm:$0xff]  }
  0xd8   :  { %1786 = vmatprep.subr.bf16.mxu0 %v3712_v39  ;;  %1958 = vmatprep.subr.bf16.mxu1 %v3715_v40  ;;  %v3803_v39 = vld [vmem:[%s5124_s3 + $0xb0] ss:$8 sps:$4 sm:$0xff]   ;;  %v3808_v40 = vld [vmem:[%s5124_s3 + $0xc4] ss:$8 sps:$4 sm:$0xff]  }
  0xdb   :  { %1787 = vmatpush1.bf16.msra.mxu0 %v3710_v41  ;;  %1959 = vmatpush1.bf16.msra.mxu1 %v3713_v42  ;;  %v3806_v41 = vld [vmem:[%s5124_s3 + $0xc0] ss:$8 sps:$4 sm:$0xff]   ;;  %v3811_v42 = vld [vmem:[%s5124_s3 + $0xd4] ss:$8 sps:$4 sm:$0xff]  }
  0xdc   :  { %1788 = vmatprep.subr.bf16.mxu0 %v3718_v43  ;;  %1960 = vmatprep.subr.bf16.mxu1 %v3721_v44  ;;  %v3809_v43 = vld [vmem:[%s5124_s3 + $0xd0] ss:$8 sps:$4 sm:$0xff]   ;;  %v3814_v44 = vld [vmem:[%s5124_s3 + $0xe4] ss:$8 sps:$4 sm:$0xff]  }
  0xdf   :  { %1789 = vmatpush1.bf16.msra.mxu0 %v3716_v45  ;;  %1961 = vmatpush1.bf16.msra.mxu1 %v3719_v46  ;;  %v3812_v45 = vld [vmem:[%s5124_s3 + $0xe0] ss:$8 sps:$4 sm:$0xff]   ;;  %v3817_v46 = vld [vmem:[%s5124_s3 + $0xf4] ss:$8 sps:$4 sm:$0xff]  }
  0xe0   :  { %1790 = vmatprep.subr.bf16.mxu0 %v3724_v47  ;;  %1962 = vmatprep.subr.bf16.mxu1 %v3727_v48  ;;  %v3815_v47 = vld [vmem:[%s5124_s3 + $0xf0] ss:$8 sps:$4 sm:$0xff]   ;;  %v3820_v48 = vld [vmem:[%s5124_s3 + $0x104] ss:$8 sps:$4 sm:$0xff]  }
  0xe3   :  { %1791 = vmatpush1.bf16.msra.mxu0 %v3722_v49  ;;  %1963 = vmatpush1.bf16.msra.mxu1 %v3725_v50  ;;  %v3866_v49 = vld [vmem:[%s5125_s5 + $0x40] sm:$0xff]  }
  0xe4   :  { %1792 = vmatprep.subr.bf16.mxu0 %v3730_v51  ;;  %1964 = vmatprep.subr.bf16.mxu1 %v3733_v52  ;;  %v3867_v50 = vld [vmem:[%s5125_s5] sm:$0xff]   ;;  %v3868_v51 = vld [vmem:[%s5125_s5 + $0x48] sm:$0xff]  }
  0xe5   :  { %v3869_v52 = vld [vmem:[%s5125_s5 + $0x8] sm:$0xff]  }
  0xe7   :  { %1793 = vmatpush1.bf16.msra.mxu0 %v3728_v53  ;;  %1965 = vmatpush1.bf16.msra.mxu1 %v3731_v54  ;;  %v3870_v53 = vld [vmem:[%s5125_s5 + $0x50] sm:$0xff]  }
  0xe8   :  { %1794 = vmatprep.subr.bf16.mxu0 %v3736_v55  ;;  %1966 = vmatprep.subr.bf16.mxu1 %v3739_v56  ;;  %v3871_v54 = vld [vmem:[%s5125_s5 + $0x10] sm:$0xff]   ;;  %v3872_v55 = vld [vmem:[%s5125_s5 + $0x58] sm:$0xff]  }
  0xe9   :  { %v3873_v56 = vld [vmem:[%s5125_s5 + $0x18] sm:$0xff]  }
  0xeb   :  { %1795 = vmatpush1.bf16.msra.mxu0 %v3734_v57  ;;  %1967 = vmatpush1.bf16.msra.mxu1 %v3737_v58  ;;  %v3874_v57 = vld [vmem:[%s5125_s5 + $0x60] sm:$0xff]  }
  0xec   :  { %1796 = vmatprep.subr.bf16.mxu0 %v3742_v59  ;;  %1968 = vmatprep.subr.bf16.mxu1 %v3745_v60  ;;  %v3875_v58 = vld [vmem:[%s5125_s5 + $0x20] sm:$0xff]   ;;  %v3876_v59 = vld [vmem:[%s5125_s5 + $0x68] sm:$0xff]   ;;  %v305_v60 = vlaneseq }
  0xef   :  { %1797 = vmatpush1.bf16.msra.mxu0 %v3740_v61  ;;  %1969 = vmatpush1.bf16.msra.mxu1 %v3743_v62  ;;  %v4908_v61 = vshrl.u32 %v305_v60, 7  ;;  %v3859_v60 = vld [vmem:[%s5124_s3 + $0x1d4] ss:$8 sps:$4 sm:$0xff]  }
  0xf0   :  { %1798 = vmatprep.subr.bf16.mxu0 %v3748_v63  ;;  %1970 = vmatprep.subr.bf16.mxu1 %v3751_v0  ;;  %v303_v0 = vld [vmem:[%s5126_s2] sm:$0xf] }
  0xf1   :  { %v307_v62 = vsub.s32 0, %v4908_v61  ;;  %v315_v63 = vsub.s32 2, %v4908_v61 }
  0xf3   :  { %1799 = vmatpush1.bf16.msra.mxu0 %v3746_v1  ;;  %1971 = vmatpush1.bf16.msra.mxu1 %v3749_v2  ;;  %v311_v1 = vsub.s32 1, %v4908_v61  ;;  %v319_v2 = vsub.s32 3, %v4908_v61  ;;  %v3883_v61 = vld [vmem:[%s5127_s7 + $0x8] sm:$0xff]  }
  0xf4   :  { %1800 = vmatprep.subr.bf16.mxu0 %v3754_v3  ;;  %1972 = vmatprep.subr.bf16.mxu1 %v3757_v4  ;;  %v308_v3 = vrot.slane %v303_v0, %v307_v62  ;;  %v316_v4 = vrot.slane %v303_v0, %v315_v63  ;;  %v3857_v63 = vld [vmem:[%s5124_s3 + $0x1d0] ss:$8 sps:$4 sm:$0xff]  }
  0xf7   :  { %1801 = vmatpush1.bf16.msra.mxu0 %v3752_v5  ;;  %1973 = vmatpush1.bf16.msra.mxu1 %v3755_v6  ;;  %v312_v5 = vrot.slane %v303_v0, %v311_v1  ;;  %v320_v6 = vrot.slane %v303_v0, %v319_v2  ;;  %v3862_v0 = vld [vmem:[%s5124_s3 + $0x1e4] ss:$8 sps:$4 sm:$0xff]   ;;  %v3860_v2 = vld [vmem:[%s5124_s3 + $0x1e0] ss:$8 sps:$4 sm:$0xff]  }
  0xf8   :  { %1802 = vmatprep.subr.bf16.mxu0 %v3760_v7  ;;  %1974 = vmatprep.subr.bf16.mxu1 %v3763_v8 }
  0xfb   :  { %1803 = vmatpush1.bf16.msra.mxu0 %v3758_v9  ;;  %1975 = vmatpush1.bf16.msra.mxu1 %v3761_v10 }
  0xfc   :  { %1804 = vmatprep.subr.bf16.mxu0 %v3766_v11  ;;  %1976 = vmatprep.subr.bf16.mxu1 %v3769_v12 }
  0xff   :  { %1805 = vmatpush1.bf16.msra.mxu0 %v3764_v13  ;;  %1977 = vmatpush1.bf16.msra.mxu1 %v3767_v16 }
 0x100   :  { %2397 = vmatprep.subr.bf16.mxu0 %v3772_v17  ;;  %3264 = vmatprep.subr.bf16.mxu1 %v3866_v49  ;;  %v3839_v49 = vld [vmem:[%s5124_s3 + $0x170] ss:$8 sps:$4 sm:$0xff]  }
 0x102   :  { %1807 = vmatmul.mubr.bf16.vlgmr.msra.gmra.mrb[0].mxu0 %v2907_v18  ;;  %1979 = vmatmul.mubr.bf16.vlgmr.msra.gmra.mrb[0].mxu1 %v2907_v18 }
 0x103   :  { %2398 = vmatpush1.bf16.msra.mxu0 %v3770_v14  ;;  %3265 = vmatpush3.bf16.msra.mxu1 %v3867_v50  ;;  %v3844_v50 = vld [vmem:[%s5124_s3 + $0x184] ss:$8 sps:$4 sm:$0xff]  }
 0x104   :  { %2399 = vmatprep.subr.bf16.mxu0 %v3775_v15  ;;  %3266 = vmatprep.subr.bf16.mxu1 %v3868_v51  ;;  %v3842_v51 = vld [vmem:[%s5124_s3 + $0x180] ss:$8 sps:$4 sm:$0xff]  }
 0x107   :  { %2400 = vmatpush1.bf16.msra.mxu0 %v3773_v21  ;;  %3267 = vmatpush3.bf16.msra.mxu1 %v3869_v52  ;;  %v3847_v52 = vld [vmem:[%s5124_s3 + $0x194] ss:$8 sps:$4 sm:$0xff]  }
 0x108   :  { %2401 = vmatprep.subr.bf16.mxu0 %v3778_v19  ;;  %3268 = vmatprep.subr.bf16.mxu1 %v3870_v53  ;;  %v3845_v53 = vld [vmem:[%s5124_s3 + $0x190] ss:$8 sps:$4 sm:$0xff]  }
 0x10b   :  { %2402 = vmatpush1.bf16.msra.mxu0 %v3776_v20  ;;  %3269 = vmatpush3.bf16.msra.mxu1 %v3871_v54  ;;  %v3850_v54 = vld [vmem:[%s5124_s3 + $0x1a4] ss:$8 sps:$4 sm:$0xff]  }
 0x10c   :  { %2403 = vmatprep.subr.bf16.mxu0 %v3781_v22  ;;  %3270 = vmatprep.subr.bf16.mxu1 %v3872_v55  ;;  %v3848_v55 = vld [vmem:[%s5124_s3 + $0x1a0] ss:$8 sps:$4 sm:$0xff]  }
 0x10f   :  { %2404 = vmatpush1.bf16.msra.mxu0 %v3779_v23  ;;  %3271 = vmatpush3.bf16.msra.mxu1 %v3873_v56  ;;  %v3853_v56 = vld [vmem:[%s5124_s3 + $0x1b4] ss:$8 sps:$4 sm:$0xff]  }
 0x110   :  { %2405 = vmatprep.subr.bf16.mxu0 %v3784_v24  ;;  %3272 = vmatprep.subr.bf16.mxu1 %v3874_v57  ;;  %v3851_v57 = vld [vmem:[%s5124_s3 + $0x1b0] ss:$8 sps:$4 sm:$0xff]  }
 0x113   :  { %2406 = vmatpush1.bf16.msra.mxu0 %v3782_v25  ;;  %3273 = vmatpush3.bf16.msra.mxu1 %v3875_v58  ;;  %v3856_v58 = vld [vmem:[%s5124_s3 + $0x1c4] ss:$8 sps:$4 sm:$0xff]  }
 0x114   :  { %2407 = vmatprep.subr.bf16.mxu0 %v3787_v26  ;;  %3274 = vmatprep.subr.bf16.mxu1 %v3876_v59  ;;  %v3854_v59 = vld [vmem:[%s5124_s3 + $0x1c0] ss:$8 sps:$4 sm:$0xff]  }
 0x117   :  { %2408 = vmatpush1.bf16.msra.mxu0 %v3785_v27 }
 0x118   :  { %2409 = vmatprep.subr.bf16.mxu0 %v3790_v28 }
 0x11b   :  { %2410 = vmatpush1.bf16.msra.mxu0 %v3788_v29 }
 0x11c   :  { %2411 = vmatprep.subr.bf16.mxu0 %v3793_v30 }
 0x11f   :  { %2412 = vmatpush1.bf16.msra.mxu0 %v3791_v31 }
 0x120   :  { %2413 = vmatprep.subr.bf16.mxu0 %v3796_v32 }
 0x123   :  { %2414 = vmatpush1.bf16.msra.mxu0 %v3794_v33 }
 0x124   :  { %2415 = vmatprep.subr.bf16.mxu0 %v3799_v34 }
 0x127   :  { %2416 = vmatpush1.bf16.msra.mxu0 %v3797_v35  ;;  %v3818_v35 = vld [vmem:[%s5124_s3 + $0x100] ss:$8 sps:$4 sm:$0xff]  }
 0x128   :  { %2417 = vmatprep.subr.bf16.mxu0 %v3802_v36  ;;  %v3823_v36 = vld [vmem:[%s5124_s3 + $0x114] ss:$8 sps:$4 sm:$0xff]  }
 0x12b   :  { %2418 = vmatpush1.bf16.msra.mxu0 %v3800_v37  ;;  %v3821_v37 = vld [vmem:[%s5124_s3 + $0x110] ss:$8 sps:$4 sm:$0xff]  }
 0x12c   :  { %2419 = vmatprep.subr.bf16.mxu0 %v3805_v38  ;;  %v3826_v38 = vld [vmem:[%s5124_s3 + $0x124] ss:$8 sps:$4 sm:$0xff]  }
 0x12f   :  { %2420 = vmatpush1.bf16.msra.mxu0 %v3803_v39  ;;  %v3824_v39 = vld [vmem:[%s5124_s3 + $0x120] ss:$8 sps:$4 sm:$0xff]  }
 0x130   :  { %2421 = vmatprep.subr.bf16.mxu0 %v3808_v40  ;;  %v3829_v40 = vld [vmem:[%s5124_s3 + $0x134] ss:$8 sps:$4 sm:$0xff]  }
 0x133   :  { %2422 = vmatpush1.bf16.msra.mxu0 %v3806_v41  ;;  %v3827_v41 = vld [vmem:[%s5124_s3 + $0x130] ss:$8 sps:$4 sm:$0xff]  }
 0x134   :  { %2423 = vmatprep.subr.bf16.mxu0 %v3811_v42  ;;  %v3832_v42 = vld [vmem:[%s5124_s3 + $0x144] ss:$8 sps:$4 sm:$0xff]  }
 0x137   :  { %2424 = vmatpush1.bf16.msra.mxu0 %v3809_v43  ;;  %v3830_v43 = vld [vmem:[%s5124_s3 + $0x140] ss:$8 sps:$4 sm:$0xff]  }
 0x138   :  { %2425 = vmatprep.subr.bf16.mxu0 %v3814_v44  ;;  %v3835_v44 = vld [vmem:[%s5124_s3 + $0x154] ss:$8 sps:$4 sm:$0xff]  }
 0x13b   :  { %2426 = vmatpush1.bf16.msra.mxu0 %v3812_v45  ;;  %v3833_v45 = vld [vmem:[%s5124_s3 + $0x150] ss:$8 sps:$4 sm:$0xff]  }
 0x13c   :  { %2427 = vmatprep.subr.bf16.mxu0 %v3817_v46  ;;  %v3838_v46 = vld [vmem:[%s5124_s3 + $0x164] ss:$8 sps:$4 sm:$0xff]  }
 0x13f   :  { %2428 = vmatpush1.bf16.msra.mxu0 %v3815_v47  ;;  %v3836_v47 = vld [vmem:[%s5124_s3 + $0x160] ss:$8 sps:$4 sm:$0xff]  }
 0x140   :  { %2440 = vmatprep.subr.bf16.mxu0 %v3820_v48  ;;  %v3841_v48 = vld [vmem:[%s5124_s3 + $0x174] ss:$8 sps:$4 sm:$0xff]  }
 0x1d5   :  { %v1808_v7 = vpop.f32.mrb[0].mxu0  ;;  %v1980_v8 = vpop.f32.mrb[0].mxu1 }
 0x1d6   :  { %v3344_v9 = vadd.f32 %v1808_v7, %v308_v3  ;;  %v3348_v10 = vadd.f32 %v1980_v8, %v316_v4  ;;  %v1810_v11 = vpop.f32.mrb[1].mxu0  ;;  %v1982_v12 = vpop.f32.mrb[1].mxu1  ;;  %v3879_v7 = vld [vmem:[%s5125_s5 + $0x30] sm:$0xff]   ;;  %v3880_v8 = vld [vmem:[%s5125_s5 + $0x78] sm:$0xff]  }
 0x1d7   :  { %v3345_v13 = vadd.f32 %v1810_v11, %v312_v5  ;;  %v3349_v16 = vadd.f32 %v1982_v12, %v320_v6  ;;  %v1812_v17 = vpop.f32.mrb[2].mxu0  ;;  %v1984_v18 = vpop.f32.mrb[2].mxu1  ;;  %v2065_v11 = vld [vmem:[%s5128_s4] sm:$0x3] }
 0x1d8   :  { %v3346_v14 = vadd.f32 %v1812_v17, %v308_v3  ;;  %v3350_v15 = vadd.f32 %v1984_v18, %v316_v4  ;;  %v1814_v21 = vpop.f32.mrb[3].mxu0  ;;  %v1986_v19 = vpop.f32.mrb[3].mxu1  ;;  %v1989_v23 = vmax.f32 %v3344_v9, 0.0  ;;  %v1991_v24 = vmax.f32 %v3348_v10, 0.0  ;;  %v3865_v3 = vld [vmem:[%s5124_s3 + $0x1f4] ss:$8 sps:$4 sm:$0xff]  }
 0x1d9   :  { %v3347_v20 = vadd.f32 %v1814_v21, %v312_v5  ;;  %v3351_v22 = vadd.f32 %v1986_v19, %v320_v6  ;;  %v1990_v27 = vmax.f32 %v3345_v13, 0.0  ;;  %v1992_v28 = vmax.f32 %v3349_v16, 0.0  ;;  %v3863_v4 = vld [vmem:[%s5124_s3 + $0x1f0] ss:$8 sps:$4 sm:$0xff]   ;;  %v3877_v5 = vld [vmem:[%s5125_s5 + $0x28] sm:$0xff]  }
 0x1da   :  { %v1993_v25 = vmax.f32 %v3346_v14, 0.0  ;;  %v1995_v26 = vmax.f32 %v3350_v15, 0.0  ;;  %3275 = vmatpush3.bf16.msra.mxu1 %v3877_v5  ;;  %v3878_v6 = vld [vmem:[%s5125_s5 + $0x70] sm:$0xff]   ;;  %v3881_v9 = vld [vmem:[%s5125_s5 + $0x38] sm:$0xff]   ;;  %v3898_v10 = vmov 0.0   ;;  %v2070_v12 = vrot.slane %v2065_v11, %v307_v62  ;;  %v3882_v62 = vld [vmem:[%s5127_s7] sm:$0xff]  }
 0x1db   :  { %v1994_v29 = vmax.f32 %v3347_v20, 0.0  ;;  %v1996_v30 = vmax.f32 %v3351_v22, 0.0  ;;  %3276 = vmatprep.subr.bf16.mxu1 %v3878_v6  ;;  %v2074_v13 = vrot.slane %v2065_v11, %v311_v1  ;;  %v3884_v1 = vld [vmem:[%s5127_s7 + $0x10] sm:$0xff]  }
 0x1dc   :  { %v1997_v31 = vpack.c.bf16 %v1993_v25, %v1989_v23  ;;  %v4921_v32 = vpack.c.bf16 %v1995_v26, %v1991_v24 }
 0x1dd   :  { %v1998_v33 = vpack.c.bf16 %v1994_v29, %v1990_v27  ;;  %v2000_v34 = vpack.c.bf16 %v1996_v30, %v1992_v28  ;;  %v3885_v28 = vld [vmem:[%s5127_s7 + $0x18] sm:$0xff]   ;;  %v3886_v29 = vld [vmem:[%s5127_s7 + $0x20] sm:$0xff]   ;;  %v3887_v30 = vld [vmem:[%s5127_s7 + $0x28] sm:$0xff]  }
 0x1de   :  { %3277 = vmatpush3.bf16.msra.mxu1 %v3879_v7 }
 0x1df   :  { %2429 = vmatprep.mubr.bf16.mxu0 %v1998_v33  ;;  %3278 = vmatprep.subr.bf16.mxu1 %v3880_v8 }
 0x1e0   :  { %2430 = vmatmul.mubr.bf16.vlgmr.msra.gmra.mrb[4].mxu0 %v1997_v31  ;;  %v3888_v31 = vld [vmem:[%s5127_s7 + $0x30] sm:$0xff]  }
 0x1e1   :  { %2441 = vmatpush1.bf16.msra.mxu0 %v3818_v35  ;;  %2472 = vmatprep.mubr.bf16.mxu0 %v2000_v34  ;;  %v3229_v34 = vld [vmem:[%s5130_s6] ss:$0 sm:$0xff] }
 0x1e2   :  { %2442 = vmatprep.subr.bf16.mxu0 %v3823_v36  ;;  %3279 = vmatpush3.bf16.msra.mxu1 %v3881_v9 }
 0x1e3   :  { %3304 = vmatprep.subr.bf16.mxu1 %v3898_v10 }
 0x1e5   :  { %2443 = vmatpush1.bf16.msra.mxu0 %v3821_v37 }
 0x1e6   :  { %2444 = vmatprep.subr.bf16.mxu0 %v3826_v38 }
 0x1e9   :  { %2445 = vmatpush1.bf16.msra.mxu0 %v3824_v39 }
 0x1ea   :  { %2446 = vmatprep.subr.bf16.mxu0 %v3829_v40 }
 0x1ed   :  { %2447 = vmatpush1.bf16.msra.mxu0 %v3827_v41 }
 0x1ee   :  { %2448 = vmatprep.subr.bf16.mxu0 %v3832_v42 }
 0x1f1   :  { %2449 = vmatpush1.bf16.msra.mxu0 %v3830_v43 }
 0x1f2   :  { %2450 = vmatprep.subr.bf16.mxu0 %v3835_v44  ;;  %v3890_v44 = vld [vmem:[%s5129_s9] sm:$0xff]  }
 0x1f5   :  { %2451 = vmatpush1.bf16.msra.mxu0 %v3833_v45 }
 0x1f6   :  { %2452 = vmatprep.subr.bf16.mxu0 %v3838_v46  ;;  %v3891_v46 = vld [vmem:[%s5129_s9 + $0x8] sm:$0xff]  }
 0x1f9   :  { %2453 = vmatpush1.bf16.msra.mxu0 %v3836_v47  ;;  %v3892_v47 = vld [vmem:[%s5129_s9 + $0x10] sm:$0xff]  }
 0x1fa   :  { %2454 = vmatprep.subr.bf16.mxu0 %v3841_v48  ;;  %v3893_v48 = vld [vmem:[%s5129_s9 + $0x18] sm:$0xff]  }
 0x1fd   :  { %2455 = vmatpush1.bf16.msra.mxu0 %v3839_v49  ;;  %v3894_v49 = vld [vmem:[%s5129_s9 + $0x20] sm:$0xff]  }
 0x1fe   :  { %2456 = vmatprep.subr.bf16.mxu0 %v3844_v50  ;;  %v3895_v50 = vld [vmem:[%s5129_s9 + $0x28] sm:$0xff]  }
 0x201   :  { %2457 = vmatpush1.bf16.msra.mxu0 %v3842_v51  ;;  %v3896_v51 = vld [vmem:[%s5129_s9 + $0x30] sm:$0xff]  }
 0x202   :  { %2458 = vmatprep.subr.bf16.mxu0 %v3847_v52  ;;  %v3897_v52 = vld [vmem:[%s5129_s9 + $0x38] sm:$0xff]  }
 0x205   :  { %2459 = vmatpush1.bf16.msra.mxu0 %v3845_v53  ;;  %v3246_v53 = vld [vmem:[%s5131_s8] ss:$0 sm:$0xff] }
 0x206   :  { %2460 = vmatprep.subr.bf16.mxu0 %v3850_v54 }
 0x209   :  { %2461 = vmatpush1.bf16.msra.mxu0 %v3848_v55 }
 0x20a   :  { %2462 = vmatprep.subr.bf16.mxu0 %v3853_v56 }
 0x20d   :  { %2463 = vmatpush1.bf16.msra.mxu0 %v3851_v57 }
 0x20e   :  { %2464 = vmatprep.subr.bf16.mxu0 %v3856_v58 }
 0x211   :  { %2465 = vmatpush1.bf16.msra.mxu0 %v3854_v59 }
 0x212   :  { %2466 = vmatprep.subr.bf16.mxu0 %v3859_v60 }
 0x215   :  { %2467 = vmatpush1.bf16.msra.mxu0 %v3857_v63 }
 0x216   :  { %2468 = vmatprep.subr.bf16.mxu0 %v3862_v0 }
 0x219   :  { %2469 = vmatpush1.bf16.msra.mxu0 %v3860_v2  ;;  %v3255_v2 = vld [vmem:[%s5132_s10] ss:$0 sm:$0xff] }
 0x21a   :  { %2470 = vmatprep.subr.bf16.mxu0 %v3865_v3 }
 0x21d   :  { %2471 = vmatpush1.bf16.msra.mxu0 %v3863_v4 }
 0x220   :  { %2473 = vmatmul.mubr.bf16.vlgmr.msra.gmra.mrb[4].mxu0 %v4921_v32  ;;  %v3889_v32 = vld [vmem:[%s5127_s7 + $0x38] sm:$0xff]  }
 0x2f3   :  { %v2474_v16 = vpop.f32.mrb[4].mxu0 }
 0x2f4   :  { %v3352_v17 = vadd.f32 %v2474_v16, %v2070_v12  ;;  %v2476_v18 = vpop.f32.mrb[5].mxu0 }
 0x2f5   :  { %v3353_v14 = vadd.f32 %v2476_v18, %v2074_v13  ;;  %v2478_v15 = vpop.f32.mrb[6].mxu0 }
 0x2f6   :  { %v3354_v21 = vadd.f32 %v2478_v15, %v2070_v12  ;;  %v2480_v19 = vpop.f32.mrb[7].mxu0  ;;  %v2483_v22 = vmax.f32 %v3352_v17, 0.0 }
 0x2f7   :  { %v3355_v20 = vadd.f32 %v2480_v19, %v2074_v13  ;;  %v2484_v24 = vmax.f32 %v3353_v14, 0.0 }
 0x2f8   :  { %v2485_v23 = vmax.f32 %v3354_v21, 0.0 }
 0x2f9   :  { %v2486_v25 = vmax.f32 %v3355_v20, 0.0 }
 0x2fa   :  { %v2487_v26 = vpack.c.bf16 %v2485_v23, %v2483_v22 }
 0x2fb   :  { %v2488_v27 = vpack.c.bf16 %v2486_v25, %v2484_v24 }
 0x2fd   :  { %2656 = vmatprep.mubr.bf16.mxu1 %v2488_v27 }
 0x2fe   :  { %2657 = vmatmul.mubr.bf16.vlgmr.msra.gmra.mrb[4].mxu1 %v2487_v26 }
 0x2ff   :  { %3305 = vmatpush3.bf16.msra.mxu1 %v3882_v62  ;;  %3320 = vmatprep.mubr.msk.bf16.mxu1 %vm3899_vm0, %v3898_v10 }
 0x300   :  { %3306 = vmatprep.subr.bf16.mxu1 %v3898_v10 }
 0x303   :  { %3307 = vmatpush3.bf16.msra.mxu1 %v3883_v61 }
 0x304   :  { %3308 = vmatprep.subr.bf16.mxu1 %v3898_v10 }
 0x307   :  { %3309 = vmatpush3.bf16.msra.mxu1 %v3884_v1 }
 0x308   :  { %3310 = vmatprep.subr.bf16.mxu1 %v3898_v10 }
 0x30b   :  { %3311 = vmatpush3.bf16.msra.mxu1 %v3885_v28 }
 0x30c   :  { %3312 = vmatprep.subr.bf16.mxu1 %v3898_v10 }
 0x30f   :  { %3313 = vmatpush3.bf16.msra.mxu1 %v3886_v29 }
 0x310   :  { %3314 = vmatprep.subr.bf16.mxu1 %v3898_v10 }
 0x313   :  { %3315 = vmatpush3.bf16.msra.mxu1 %v3887_v30 }
 0x314   :  { %3316 = vmatprep.subr.bf16.mxu1 %v3898_v10 }
 0x317   :  { %3317 = vmatpush3.bf16.msra.mxu1 %v3888_v31 }
 0x318   :  { %3318 = vmatprep.subr.bf16.mxu1 %v3898_v10 }
 0x31b   :  { %3319 = vmatpush3.bf16.msra.mxu1 %v3889_v32 }
 0x31c   :  { %3324 = vmatprep.subr.bf16.mxu1 %v3898_v10 }
 0x3d1   :  { %v3280_v33 = vpop.f32.mrb[4].mxu1 }
 0x3d2   :  { %v3281_v35 = vpop.f32.mrb[5].mxu1 }
 0x3d3   :  { %v3282_v36 = vadd.f32 %v3281_v35, %v3280_v33  ;;  %v3283_v37 = vpop.f32.mrb[6].mxu1 }
 0x3d4   :  { %v3284_v38 = vpop.f32.mrb[7].mxu1 }
 0x3d5   :  { %v2659_v39 = vadd.f32 %v3282_v36, %v3229_v34  ;;  %v3285_v40 = vadd.f32 %v3284_v38, %v3283_v37 }
 0x3d7   :  { %v2662_v41 = vadd.f32 %v3285_v40, %v3229_v34  ;;  %v2665_v42 = vmax.f32 %v2659_v39, 0.0 }
 0x3d9   :  { %v2666_v43 = vmax.f32 %v2662_v41, 0.0 }
 0x3db   :  { %v2667_v45 = vpack.c.bf16 %v2666_v43, %v2665_v42 }
 0x3dd   :  { %3321 = vmatmul.mubr.bf16.vlgmr.msra.gmra.mrb[8].mxu1 %v2667_v45 }
 0x3de   :  { %3325 = vmatpush3.bf16.msra.mxu1 %v3890_v44  ;;  %3340 = vmatprep.mubr.msk.bf16.mxu1 %vm3899_vm0, %v3898_v10 }
 0x3df   :  { %3326 = vmatprep.subr.bf16.mxu1 %v3898_v10 }
 0x3e2   :  { %3327 = vmatpush3.bf16.msra.mxu1 %v3891_v46 }
 0x3e3   :  { %3328 = vmatprep.subr.bf16.mxu1 %v3898_v10 }
 0x3e6   :  { %3329 = vmatpush3.bf16.msra.mxu1 %v3892_v47 }
 0x3e7   :  { %3330 = vmatprep.subr.bf16.mxu1 %v3898_v10 }
 0x3ea   :  { %3331 = vmatpush3.bf16.msra.mxu1 %v3893_v48 }
 0x3eb   :  { %3332 = vmatprep.subr.bf16.mxu1 %v3898_v10 }
 0x3ee   :  { %3333 = vmatpush3.bf16.msra.mxu1 %v3894_v49 }
 0x3ef   :  { %3334 = vmatprep.subr.bf16.mxu1 %v3898_v10 }
 0x3f2   :  { %3335 = vmatpush3.bf16.msra.mxu1 %v3895_v50 }
 0x3f3   :  { %3336 = vmatprep.subr.bf16.mxu1 %v3898_v10 }
 0x3f6   :  { %3337 = vmatpush3.bf16.msra.mxu1 %v3896_v51 }
 0x3f7   :  { %3338 = vmatprep.subr.bf16.mxu1 %v3898_v10 }
 0x3fa   :  { %3339 = vmatpush3.bf16.msra.mxu1 %v3897_v52 }
 0x4b0   :  { %v2773_v54 = vpop.f32.mrb[8].mxu1 }
 0x4b1   :  { %v2774_v55 = vadd.f32 %v3246_v53, %v2773_v54  ;;  %v3322_v56 = vpop.f32.mrb[9].mxu1 }
 0x4b2   :  { %v2776_v57 = vpop.f32.mrb[10].mxu1 }
 0x4b3   :  { %v2777_v58 = vadd.f32 %v3246_v53, %v2776_v57  ;;  %v3323_v59 = vpop.f32.mrb[11].mxu1  ;;  %v2780_v60 = vmax.f32 %v2774_v55, 0.0 }
 0x4b5   :  { %v2781_v63 = vmax.f32 %v2777_v58, 0.0 }
 0x4b7   :  { %v2782_v0 = vpack.c.bf16 %v2781_v63, %v2780_v60 }
 0x4b9   :  { %3341 = vmatmul.mubr.bf16.vlgmr.msra.gmra.mrb[12].mxu1 %v2782_v0 }
 0x58c   :  { %v2888_v3 = vpop.f32.mrb[12].mxu1 }
 0x58d   :  { %v2889_v4 = vadd.f32 %v3255_v2, %v2888_v3  ;;  %v3342_v5 = vpop.f32.mrb[13].mxu1 }
 0x58e   :  { %v2891_v6 = vpop.f32.mrb[14].mxu1 }
 0x58f   :  { %2895 = vst [vmem:[%s5133_s11] sm:$0xff] %v2889_v4  ;;  %v2892_v7 = vadd.f32 %v3255_v2, %v2891_v6  ;;  %v3343_v8 = vpop.f32.mrb[15].mxu1 }
 0x591   :  { %2896 = vst [vmem:[%s5133_s11 + $0x8] sm:$0xff] %v2892_v7 }

</bundles_post_ra>
